<compile_context>
chip_gen: v5e
topology: v5e:2x2
jax: 0.10.0
libtpu: 0.0.40
codegen_flags: <defaults>
</compile_context>

<pallas_src>
import jax
import jax.numpy as jnp
from jax.experimental import pallas as pl
from jax.experimental.pallas import tpu as pltpu

# ---- model dimensions (small, consistent with the module's forward) ---------
EMBED_DIM = 32        # stand-in for base_model.config.hidden_size
PROJ_DIM = 256        # hardcoded in MoERAG: nn.Linear(embedding_dim, 256)
NUM_EXPERTS = 4       # MoERAG default num_experts=4
EXPERT_HIDDEN = 256
VOCAB = 64
SEQ = 8
BATCH = 2
M_PAD = 16            # pad batch rows to one bf16 sublane tile (16 rows)


# ------------------------ fused projection + MoE kernel ----------------------
def _fused_proj_moe_kernel(x_ref, wp_ref, bp_ref, wg_ref, bg_ref,
                           w1_ref, b1_ref, w2_ref, b2_ref, o_ref):
    """Single-step fused kernel (no grid, everything resident in VMEM):

      projection matmul -> gating softmax -> stacked expert hidden matmul ->
      ReLU -> per-expert-block gate scaling -> stacked combine matmul.
    """
    f32, bf16 = jnp.float32, jnp.bfloat16
    E, Dh = NUM_EXPERTS, EXPERT_HIDDEN

    # --- projection: Linear(H, 256), bf16 operands, f32 accumulation ---------
    xp = jnp.dot(x_ref[...], wp_ref[...],
                 preferred_element_type=f32) + bp_ref[...]          # [M, D] f32
    xp_bf = xp.astype(bf16)

    # --- gating: linear + softmax over experts (f32 elementwise path) --------
    logits = jnp.dot(xp_bf, wg_ref[...],
                     preferred_element_type=f32) + bg_ref[...]      # [M, E] f32
    m = jnp.max(logits, axis=-1, keepdims=True)
    p = jnp.exp(logits - m)
    gates = p / jnp.sum(p, axis=-1, keepdims=True)                  # [M, E] f32

    # --- stacked expert hidden: ONE [M,D] @ [D, E*Dh] matmul -----------------
    h = jnp.dot(xp_bf, w1_ref[...],
                preferred_element_type=f32) + b1_ref[...]           # [M, E*Dh]
    h = jnp.maximum(h, 0.0)                                         # ReLU (f32)

    # --- fold gates into h per 256-lane expert block (static slices), then
    #     ONE [M, E*Dh] @ [E*Dh, D] matmul yields the combined output ---------
    b2 = b2_ref[...]                                                # [E, D] f32
    parts = []
    gated_bias = None
    for e in range(E):                                              # static unroll
        g_e = gates[:, e:e + 1]                                     # [M, 1] f32
        parts.append((h[:, e * Dh:(e + 1) * Dh] * g_e).astype(bf16))
        contrib = g_e * b2[e:e + 1, :]                              # [M, D] f32
        gated_bias = contrib if gated_bias is None else gated_bias + contrib
    h_scaled = jnp.concatenate(parts, axis=-1)                      # [M, E*Dh] bf16

    out = jnp.dot(h_scaled, w2_ref[...],
                  preferred_element_type=f32) + gated_bias          # [M, D] f32
    o_ref[...] = out


def fused_proj_moe(x_pad, wp, bp, wg, bg, w1s, b1s, w2s, b2):
    """x_pad: [M_PAD, H] bf16 -> [M_PAD, PROJ_DIM] f32 (fused proj + MoE)."""
    M = x_pad.shape[0]
    vmem_spec = lambda: pl.BlockSpec(memory_space=pltpu.MemorySpace.VMEM)
    return pl.pallas_call(
        _fused_proj_moe_kernel,
        out_shape=jax.ShapeDtypeStruct((M, PROJ_DIM), jnp.float32),
        in_specs=[vmem_spec() for _ in range(9)],
        out_specs=vmem_spec(),
        compiler_params=pltpu.CompilerParams(
            vmem_limit_bytes=4 * 1024 * 1024,   # actual usage < 2 MiB
        ),
    )(x_pad, wp, bp, wg, bg, w1s, b1s, w2s, b2)


# ------------------------------- params / forward ----------------------------
def init_params(key):
    ks = jax.random.split(key, 10)
    s = 0.02
    f32, bf16 = jnp.float32, jnp.bfloat16
    E, D, Dh, H = NUM_EXPERTS, PROJ_DIM, EXPERT_HIDDEN, EMBED_DIM
    return {
        # synthetic base model (plain jnp path, f32)
        "emb_table": jax.random.normal(ks[0], (VOCAB, H), f32) * s,
        "w_enc": jax.random.normal(ks[1], (H, H), f32) * s,
        "b_enc": jax.random.normal(ks[2], (1, H), f32) * s,
        # MoERAG.projection: Linear(embedding_dim, 256) — matmul weights bf16
        "w_proj": (jax.random.normal(ks[3], (H, D), f32) * s).astype(bf16),
        "b_proj": jax.random.normal(ks[4], (1, D), f32) * s,
        # PiKVMoE (approximated): gate + expert MLPs, stored *stacked*:
        #   column block e of w1s == expert e's first-layer weight [D, Dh]
        #   row    block e of w2s == expert e's second-layer weight [Dh, D]
        # (identical math to per-expert MLPs, enables the 2-matmul kernel)
        "wg": (jax.random.normal(ks[5], (D, E), f32) * s).astype(bf16),
        "bg": jnp.zeros((1, E), f32),
        "w1s": (jax.random.normal(ks[6], (D, E * Dh), f32) * s).astype(bf16),
        "b1s": jnp.zeros((1, E * Dh), f32),
        "w2s": (jax.random.normal(ks[7], (E * Dh, D), f32) * s).astype(bf16),
        "b2": jnp.zeros((E, D), f32),
    }


@jax.jit
def moe_rag_forward(params, input_ids, attention_mask):
    B, S = input_ids.shape

    # --- base_model stand-in: embedding gather + dense + tanh (XLA fuses) -----
    tok = params["emb_table"][input_ids]                                  # [B, S, H]
    hidden = jnp.tanh(tok @ params["w_enc"] + params["b_enc"])            # last_hidden_state

    # --- last_token_pool (exact semantics of the PyTorch branch) --------------
    left_padding = jnp.sum(attention_mask[:, -1]) == B                    # scalar bool
    seq_lengths = jnp.sum(attention_mask, axis=1) - 1                     # [B]
    idx = jnp.where(left_padding, S - 1, seq_lengths)                     # [B]
    pooled = hidden[jnp.arange(B), idx]                                   # [B, H]

    # --- pad rows to a full bf16 sublane tile (16 rows), bf16 matmul operand --
    x_pad = jnp.zeros((M_PAD, EMBED_DIM), jnp.bfloat16)
    x_pad = x_pad.at[:B].set(pooled.astype(jnp.bfloat16))

    # --- fused projection Linear(H, 256) + MoE (single Pallas kernel) ---------
    out = fused_proj_moe(x_pad,
                         params["w_proj"], params["b_proj"],
                         params["wg"], params["bg"],
                         params["w1s"], params["b1s"],
                         params["w2s"], params["b2"])                     # [M_PAD, 256]
    return out[:B]                                                        # [B, 256]


# --------------------------------- main ---------------------------------------
if __name__ == "__main__":
    key = jax.random.PRNGKey(0)
    k_param, k_ids = jax.random.split(key)

    params = init_params(k_param)

    input_ids = jax.random.randint(k_ids, (BATCH, SEQ), 0, VOCAB, dtype=jnp.int32)
    # right-padded attention mask (exercises the sequence-length gather branch)
    lengths = jnp.array([SEQ, 5], dtype=jnp.int32)
    attention_mask = (jnp.arange(SEQ)[None, :] < lengths[:, None]).astype(jnp.int32)

    out = moe_rag_forward(params, input_ids, attention_mask)
    jax.block_until_ready(out)
    assert out.shape == (BATCH, PROJ_DIM) and out.dtype == jnp.float32
    assert bool(jnp.all(jnp.isfinite(out)))
    print("KERNEL_OK")
</pallas_src>

<mosaic_0001>
module attributes {stable_mosaic.version = 11 : i64} {
  func.func @_fused_proj_moe_kernel(%arg0: memref<16x32xbf16, #tpu.memory_space<vmem>>, %arg1: memref<32x256xbf16, #tpu.memory_space<vmem>>, %arg2: memref<1x256xf32, #tpu.memory_space<vmem>>, %arg3: memref<256x4xbf16, #tpu.memory_space<vmem>>, %arg4: memref<1x4xf32, #tpu.memory_space<vmem>>, %arg5: memref<256x1024xbf16, #tpu.memory_space<vmem>>, %arg6: memref<1x1024xf32, #tpu.memory_space<vmem>>, %arg7: memref<1024x256xbf16, #tpu.memory_space<vmem>>, %arg8: memref<4x256xf32, #tpu.memory_space<vmem>>, %arg9: memref<16x256xf32, #tpu.memory_space<vmem>>) attributes {dimension_semantics = [], scalar_prefetch = 0 : i64, scratch_operands = 0 : i64, tpu.core_type = #tpu.core_type<tc>} {
    %c0 = arith.constant 0 : index
    %c0_0 = arith.constant 0 : index
    %0 = vector.load %arg0[%c0, %c0_0] : memref<16x32xbf16, #tpu.memory_space<vmem>>, vector<16x32xbf16>
    %c0_1 = arith.constant 0 : index
    %c0_2 = arith.constant 0 : index
    %1 = vector.load %arg1[%c0_1, %c0_2] : memref<32x256xbf16, #tpu.memory_space<vmem>>, vector<32x256xbf16>
    %cst = arith.constant dense<0.000000e+00> : vector<16x256xf32>
    %2 = tpu.matmul %0, %1, %cst {dimension_numbers = #tpu.dot_dimension_numbers<[1], [0], [0], [1], [0, 0, 1, 1], [], []>} : vector<16x32xbf16>, vector<32x256xbf16>, vector<16x256xf32> -> vector<16x256xf32>
    %c0_3 = arith.constant 0 : index
    %c0_4 = arith.constant 0 : index
    %3 = vector.load %arg2[%c0_3, %c0_4] : memref<1x256xf32, #tpu.memory_space<vmem>>, vector<1x256xf32>
    %4 = vector.broadcast %3 : vector<1x256xf32> to vector<16x256xf32>
    %5 = arith.addf %2, %4 : vector<16x256xf32>
    %6 = arith.truncf %5 : vector<16x256xf32> to vector<16x256xbf16>
    %c0_5 = arith.constant 0 : index
    %c0_6 = arith.constant 0 : index
    %7 = vector.load %arg3[%c0_5, %c0_6] : memref<256x4xbf16, #tpu.memory_space<vmem>>, vector<256x4xbf16>
    %cst_7 = arith.constant dense<0.000000e+00> : vector<16x4xf32>
    %8 = tpu.matmul %6, %7, %cst_7 {dimension_numbers = #tpu.dot_dimension_numbers<[1], [0], [0], [1], [0, 0, 1, 1], [], []>} : vector<16x256xbf16>, vector<256x4xbf16>, vector<16x4xf32> -> vector<16x4xf32>
    %c0_8 = arith.constant 0 : index
    %c0_9 = arith.constant 0 : index
    %9 = vector.load %arg4[%c0_8, %c0_9] : memref<1x4xf32, #tpu.memory_space<vmem>>, vector<1x4xf32>
    %10 = vector.broadcast %9 : vector<1x4xf32> to vector<16x4xf32>
    %11 = arith.addf %8, %10 : vector<16x4xf32>
    %cst_10 = arith.constant dense<0xFF800000> : vector<16xf32>
    %12 = vector.multi_reduction <maximumf>, %11, %cst_10 [1] : vector<16x4xf32> to vector<16xf32>
    %13 = vector.shape_cast %12 : vector<16xf32> to vector<16x1xf32>
    %14 = vector.broadcast %13 : vector<16x1xf32> to vector<16x4xf32>
    %15 = arith.subf %11, %14 : vector<16x4xf32>
    %16 = math.exp %15 : vector<16x4xf32>
    %cst_11 = arith.constant dense<0.000000e+00> : vector<16xf32>
    %17 = vector.multi_reduction <add>, %16, %cst_11 [1] : vector<16x4xf32> to vector<16xf32>
    %18 = vector.shape_cast %17 : vector<16xf32> to vector<16x1xf32>
    %19 = vector.broadcast %18 : vector<16x1xf32> to vector<16x4xf32>
    %20 = arith.divf %16, %19 : vector<16x4xf32>
    %c0_12 = arith.constant 0 : index
    %c0_13 = arith.constant 0 : index
    %21 = vector.load %arg5[%c0_12, %c0_13] : memref<256x1024xbf16, #tpu.memory_space<vmem>>, vector<256x1024xbf16>
    %cst_14 = arith.constant dense<0.000000e+00> : vector<16x1024xf32>
    %22 = tpu.matmul %6, %21, %cst_14 {dimension_numbers = #tpu.dot_dimension_numbers<[1], [0], [0], [1], [0, 0, 1, 1], [], []>} : vector<16x256xbf16>, vector<256x1024xbf16>, vector<16x1024xf32> -> vector<16x1024xf32>
    %c0_15 = arith.constant 0 : index
    %c0_16 = arith.constant 0 : index
    %23 = vector.load %arg6[%c0_15, %c0_16] : memref<1x1024xf32, #tpu.memory_space<vmem>>, vector<1x1024xf32>
    %24 = vector.broadcast %23 : vector<1x1024xf32> to vector<16x1024xf32>
    %25 = arith.addf %22, %24 : vector<16x1024xf32>
    %cst_17 = arith.constant 0.000000e+00 : f32
    %26 = vector.broadcast %cst_17 : f32 to vector<16x1024xf32>
    %27 = arith.maximumf %25, %26 : vector<16x1024xf32>
    %c0_18 = arith.constant 0 : index
    %c0_19 = arith.constant 0 : index
    %28 = vector.load %arg8[%c0_18, %c0_19] : memref<4x256xf32, #tpu.memory_space<vmem>>, vector<4x256xf32>
    %29 = vector.extract_strided_slice %20 {offsets = [0, 0], sizes = [16, 1], strides = [1, 1]} : vector<16x4xf32> to vector<16x1xf32>
    %30 = vector.extract_strided_slice %27 {offsets = [0, 0], sizes = [16, 256], strides = [1, 1]} : vector<16x1024xf32> to vector<16x256xf32>
    %31 = vector.broadcast %29 : vector<16x1xf32> to vector<16x256xf32>
    %32 = arith.mulf %30, %31 : vector<16x256xf32>
    %33 = arith.truncf %32 : vector<16x256xf32> to vector<16x256xbf16>
    %34 = vector.extract_strided_slice %28 {offsets = [0, 0], sizes = [1, 256], strides = [1, 1]} : vector<4x256xf32> to vector<1x256xf32>
    %35 = vector.broadcast %29 : vector<16x1xf32> to vector<16x256xf32>
    %36 = vector.broadcast %34 : vector<1x256xf32> to vector<16x256xf32>
    %37 = arith.mulf %35, %36 : vector<16x256xf32>
    %38 = vector.extract_strided_slice %20 {offsets = [0, 1], sizes = [16, 1], strides = [1, 1]} : vector<16x4xf32> to vector<16x1xf32>
    %39 = vector.extract_strided_slice %27 {offsets = [0, 256], sizes = [16, 256], strides = [1, 1]} : vector<16x1024xf32> to vector<16x256xf32>
    %40 = vector.broadcast %38 : vector<16x1xf32> to vector<16x256xf32>
    %41 = arith.mulf %39, %40 : vector<16x256xf32>
    %42 = arith.truncf %41 : vector<16x256xf32> to vector<16x256xbf16>
    %43 = vector.extract_strided_slice %28 {offsets = [1, 0], sizes = [1, 256], strides = [1, 1]} : vector<4x256xf32> to vector<1x256xf32>
    %44 = vector.broadcast %38 : vector<16x1xf32> to vector<16x256xf32>
    %45 = vector.broadcast %43 : vector<1x256xf32> to vector<16x256xf32>
    %46 = arith.mulf %44, %45 : vector<16x256xf32>
    %47 = arith.addf %37, %46 : vector<16x256xf32>
    %48 = vector.extract_strided_slice %20 {offsets = [0, 2], sizes = [16, 1], strides = [1, 1]} : vector<16x4xf32> to vector<16x1xf32>
    %49 = vector.extract_strided_slice %27 {offsets = [0, 512], sizes = [16, 256], strides = [1, 1]} : vector<16x1024xf32> to vector<16x256xf32>
    %50 = vector.broadcast %48 : vector<16x1xf32> to vector<16x256xf32>
    %51 = arith.mulf %49, %50 : vector<16x256xf32>
    %52 = arith.truncf %51 : vector<16x256xf32> to vector<16x256xbf16>
    %53 = vector.extract_strided_slice %28 {offsets = [2, 0], sizes = [1, 256], strides = [1, 1]} : vector<4x256xf32> to vector<1x256xf32>
    %54 = vector.broadcast %48 : vector<16x1xf32> to vector<16x256xf32>
    %55 = vector.broadcast %53 : vector<1x256xf32> to vector<16x256xf32>
    %56 = arith.mulf %54, %55 : vector<16x256xf32>
    %57 = arith.addf %47, %56 : vector<16x256xf32>
    %58 = vector.extract_strided_slice %20 {offsets = [0, 3], sizes = [16, 1], strides = [1, 1]} : vector<16x4xf32> to vector<16x1xf32>
    %59 = vector.extract_strided_slice %27 {offsets = [0, 768], sizes = [16, 256], strides = [1, 1]} : vector<16x1024xf32> to vector<16x256xf32>
    %60 = vector.broadcast %58 : vector<16x1xf32> to vector<16x256xf32>
    %61 = arith.mulf %59, %60 : vector<16x256xf32>
    %62 = arith.truncf %61 : vector<16x256xf32> to vector<16x256xbf16>
    %63 = vector.extract_strided_slice %28 {offsets = [3, 0], sizes = [1, 256], strides = [1, 1]} : vector<4x256xf32> to vector<1x256xf32>
    %64 = vector.broadcast %58 : vector<16x1xf32> to vector<16x256xf32>
    %65 = vector.broadcast %63 : vector<1x256xf32> to vector<16x256xf32>
    %66 = arith.mulf %64, %65 : vector<16x256xf32>
    %67 = arith.addf %57, %66 : vector<16x256xf32>
    %68 = tpu.concatenate %33, %42, %52, %62 in 1 : vector<16x256xbf16>, vector<16x256xbf16>, vector<16x256xbf16>, vector<16x256xbf16> -> vector<16x1024xbf16>
    %c0_20 = arith.constant 0 : index
    %c0_21 = arith.constant 0 : index
    %69 = vector.load %arg7[%c0_20, %c0_21] : memref<1024x256xbf16, #tpu.memory_space<vmem>>, vector<1024x256xbf16>
    %cst_22 = arith.constant dense<0.000000e+00> : vector<16x256xf32>
    %70 = tpu.matmul %68, %69, %cst_22 {dimension_numbers = #tpu.dot_dimension_numbers<[1], [0], [0], [1], [0, 0, 1, 1], [], []>} : vector<16x1024xbf16>, vector<1024x256xbf16>, vector<16x256xf32> -> vector<16x256xf32>
    %71 = arith.addf %70, %67 : vector<16x256xf32>
    %c0_23 = arith.constant 0 : index
    %c0_24 = arith.constant 0 : index
    %72 = vector.load %arg9[%c0_23, %c0_24] : memref<16x256xf32, #tpu.memory_space<vmem>>, vector<16x256xf32>
    tpu.vector_store %arg9[%c0_23, %c0_24], %71 {strides = array<i32>} : memref<16x256xf32, #tpu.memory_space<vmem>>, vector<16x256xf32>,
    return
  }
}

</mosaic_0001>

<bundles_post_ra>
// kernel: moe_rag_forward.1
= control target key start
LH: loop header
LB: loop body
LE: loop exit
PB: predicated region body
PF: predicated region fallthrough
CT: control target
= control target key end

     0   :  { %14 = vsyncpa [#allocation3], 0  ;;  %s4436_s0 = inlined_call_operand.vmem [shape: bf16[16,32], index: 0, kind: input, shape index: {}]   ;;  %s4437_s1 = inlined_call_operand.vmem [shape: bf16[32,256], index: 1, kind: input, shape index: {}]   ;;  %s4438_s2 = inlined_call_operand.vmem [shape: f32[1,256], index: 2, kind: input, shape index: {}]   ;;  %s4439_s3 = inlined_call_operand.vmem [shape: bf16[256,4], index: 3, kind: input, shape index: {}]   ;;  %s4440_s4 = inlined_call_operand.vmem [shape: f32[1,4], index: 4, kind: input, shape index: {}]   ;;  %s4441_s5 = inlined_call_operand.hbm [shape: bf16[256,1024], index: 5, kind: input, shape index: {}]   ;;  %s4442_s6 = inlined_call_operand.vmem [shape: f32[1,1024], index: 6, kind: input, shape index: {}]   ;;  %s4443_s7 = inlined_call_operand.hbm [shape: bf16[1024,256], index: 7, kind: input, shape index: {}]   ;;  %s4444_s8 = inlined_call_operand.vmem [shape: f32[4,256], index: 8, kind: input, shape index: {}]   ;;  %s4445_s9 = inlined_call_operand.vmem [shape: f32[16,256], index: 9, kind: output, shape index: {}]  }
   0x1   :  { %s30_s11 = sshll.u32 %s4441_s5, 4  ;;  %s31_s11 = int_to_ptr.hbm [resolvable:$true] %s30_s11 }
   0x2   :  { %15 = vsyncpa [#allocation5], 0  ;;  %s3991_s12 = smov [#allocation2]   ;;  %s45_s16 = sshll.u32 %s4443_s7, 4  ;;  %s46_s16 = int_to_ptr.hbm [resolvable:$true] %s45_s16 }
   0x3   :  { %s32_s13 = sshll.u32 %s3991_s12, 4  ;;  %s3992_s17 = smov 512   ;;  %s33_s13 = int_to_ptr.vmem [resolvable:$true] %s32_s13 }
   0x4   :  { %s3993_s18 = smov 32   ;;  %s3994_s19 = smov [#allocation4]  }
   0x5   :  { %38 = dma.hbm_to_vmem [thread:$0]  %s31_s11, 16384, %s33_s13, [#allocation3], %s3992_s17, %s3992_s17, %s3993_s18  }
   0x6   :  { %s47_s20 = sshll.u32 %s3994_s19, 4  ;;  %s3995_s21 = smov 128   ;;  %s48_s20 = int_to_ptr.vmem [resolvable:$true] %s47_s20 }
   0x7   :  { %s3996_s22 = smov 8  }
   0x8   :  { %53 = dma.hbm_to_vmem [thread:$0]  %s46_s16, 16384, %s48_s20, [#allocation5], %s3995_s21, %s3995_s21, %s3996_s22  }
   0x9   :  { %3987 = dma.done.wait [#allocation3], 16384  }
   0xa   :  { %3988 = vsyncadd [#allocation3], 4294950912 }
   0xb   :  { %3989 = dma.done.wait [#allocation5], 16384  }
   0xc   :  { %3990 = vsyncadd [#allocation5], 4294950912  ;;  %v2539_v0 = vld [vmem:[%s4437_s1 + $0x10] sm:$0xf]  ;;  %v3639_v1 = vld [vmem:[%s4437_s1 + $0x14] sm:$0xf0] }
   0xd   :  { %v3638_v2 = vld [vmem:[%s4437_s1 + $0x14] sm:$0xf]  ;;  %v2540_v3 = vor.u32 %v3639_v1, %v2539_v0  ;;  %v2541_v4 = vld [vmem:[%s4437_s1 + $0x18] sm:$0xf0]  ;;  %v2531_v5 = vld [vmem:[%s4437_s1] sm:$0xf] }
   0xe   :  { %v3637_v6 = vld [vmem:[%s4437_s1 + $0x4] sm:$0xf0]  ;;  %v2544_v7 = vor.u32 %v3638_v2, %v2541_v4  ;;  %v3636_v8 = vld [vmem:[%s4437_s1 + $0x4] sm:$0xf]  ;;  %v2533_v9 = vld [vmem:[%s4437_s1 + $0x8] sm:$0xf0] }
   0xf   :  { %112 = vmatpush.bf16.msra.mxu0 %v2540_v3  ;;  %v2532_v10 = vor.u32 %v3637_v6, %v2531_v5  ;;  %v3647_v11 = vld [vmem:[%s4439_s3 + $0x38] sm:$0xff]  ;;  %v2837_v13 = vld [vmem:[#allocation2 + $0x1c0] sm:$0xf]  ;;  %v2536_v14 = vor.u32 %v3636_v8, %v2533_v9  ;;  %v3646_v21 = vld [vmem:[%s4439_s3 + $0x30] sm:$0xff]  ;;  %vm102_vm0 = vcmask 261120   ;;  %vm296_vm1 = vcmask 31744  }
  0x10   :  { %v3655_v12 = vld [vmem:[%s4439_s3 + $0x78] sm:$0xff]  ;;  %126 = vmatpush.bf16.msra.mxu1 %v2544_v7  ;;  %v3635_v15 = vld [vmem:[%s4436_s0] sm:$0xff]  ;;  %268 = vmatpush.bf16.msra.mxu2 %v3647_v11  ;;  %v3654_v22 = vld [vmem:[%s4439_s3 + $0x70] sm:$0xff] }
  0x11   :  { %v3716_v16 = vld [vmem:[#allocation2 + $0x1dc] sm:$0xf0]  ;;  %282 = vmatpush.bf16.msra.mxu3 %v3655_v12  ;;  %v3645_v29 = vld [vmem:[%s4439_s3 + $0x28] sm:$0xff]  ;;  %v3643_v45 = vld [vmem:[%s4439_s3 + $0x18] sm:$0xff] }
  0x12   :  { %v3093_v17 = vld [vmem:[#allocation2 + $0x3c0] sm:$0xf]  ;;  %v2838_v19 = vor.u32 %v3716_v16, %v2837_v13  ;;  %v3653_v32 = vld [vmem:[%s4439_s3 + $0x68] sm:$0xff]  ;;  %v3651_v48 = vld [vmem:[%s4439_s3 + $0x58] sm:$0xff] }
  0x13   :  { %v3780_v18 = vld [vmem:[#allocation2 + $0x3dc] sm:$0xf0]  ;;  %113 = vmatpush.bf16.msra.mxu0 %v2532_v10  ;;  %v3642_v53 = vld [vmem:[%s4439_s3 + $0x10] sm:$0xff]  ;;  %v3641_v61 = vld [vmem:[%s4439_s3 + $0x8] sm:$0xff] }
  0x14   :  { %v3094_v20 = vor.u32 %v3780_v18, %v3093_v17  ;;  %v2805_v23 = vld [vmem:[#allocation2 + $0x180] sm:$0xf]  ;;  %127 = vmatpush.bf16.msra.mxu1 %v2536_v14  ;;  %269 = vmatpush.bf16.msra.mxu2 %v3646_v21  ;;  %v3650_v56 = vld [vmem:[%s4439_s3 + $0x50] sm:$0xff]  ;;  %v3649_v0 = vld [vmem:[%s4439_s3 + $0x48] sm:$0xff] }
  0x15   :  { %v3708_v24 = vld [vmem:[#allocation2 + $0x19c] sm:$0xf0]  ;;  %283 = vmatpush.bf16.msra.mxu3 %v3654_v22  ;;  %v3712_v5 = vld [vmem:[#allocation2 + $0x1c4] sm:$0xf]  ;;  %v3717_v17 = vld [vmem:[#allocation2 + $0x1e4] sm:$0xf0] }
  0x16   :  { %v3061_v25 = vld [vmem:[#allocation2 + $0x380] sm:$0xf]  ;;  %v2806_v27 = vor.u32 %v3708_v24, %v2805_v23  ;;  %2545 = vmatmul.msk.bf16.vlgmr.msra.gmra.mxu0 %vm102_vm0, %v3635_v15  ;;  %v2839_v6 = vld [vmem:[#allocation2 + $0x1e0] sm:$0xf0]  ;;  %v3101_v18 = vld [vmem:[#allocation2 + $0x3c8] sm:$0xf] }
  0x17   :  { %v3772_v26 = vld [vmem:[#allocation2 + $0x39c] sm:$0xf0]  ;;  %1131 = vmatpush.bf16.msrb.mxu0 %v2838_v19  ;;  %2546 = vmatmul.msk.bf16.vlgmr.msra.gmra.mxu1 %vm102_vm0, %v3635_v15  ;;  %v3776_v10 = vld [vmem:[#allocation2 + $0x3c4] sm:$0xf]  ;;  %v2845_v15 = vld [vmem:[#allocation2 + $0x1c8] sm:$0xf]  ;;  %v2842_v16 = vor.u32 %v3712_v5, %v2839_v6 }
  0x18   :  { %1145 = vmatpush.bf16.msrb.mxu1 %v3094_v20  ;;  %v3062_v28 = vor.u32 %v3772_v26, %v3061_v25  ;;  %v2773_v30 = vld [vmem:[#allocation2 + $0x140] sm:$0xf]  ;;  %270 = vmatpush.bf16.msra.mxu2 %v3645_v29  ;;  %v3095_v11 = vld [vmem:[#allocation2 + $0x3e0] sm:$0xf0]  ;;  %v3781_v20 = vld [vmem:[#allocation2 + $0x3e4] sm:$0xf0] }
  0x19   :  { %v3700_v31 = vld [vmem:[#allocation2 + $0x15c] sm:$0xf0]  ;;  %284 = vmatpush.bf16.msra.mxu3 %v3653_v32  ;;  %v3098_v19 = vor.u32 %v3776_v10, %v3095_v11  ;;  %v3704_v21 = vld [vmem:[#allocation2 + $0x184] sm:$0xf]  ;;  %v3069_v32 = vld [vmem:[#allocation2 + $0x388] sm:$0xf] }
  0x1a   :  { %v3029_v33 = vld [vmem:[#allocation2 + $0x340] sm:$0xf]  ;;  %v2774_v35 = vor.u32 %v3700_v31, %v2773_v30  ;;  %v2807_v22 = vld [vmem:[#allocation2 + $0x1a0] sm:$0xf0]  ;;  %v2813_v30 = vld [vmem:[#allocation2 + $0x188] sm:$0xf] }
  0x1b   :  { %v3764_v34 = vld [vmem:[#allocation2 + $0x35c] sm:$0xf0]  ;;  %1132 = vmatpush.bf16.msrb.mxu0 %v2806_v27  ;;  %v3768_v24 = vld [vmem:[#allocation2 + $0x384] sm:$0xf]  ;;  %v2846_v27 = vor.u32 %v3717_v17, %v2845_v15  ;;  %v2810_v29 = vor.u32 %v3704_v21, %v2807_v22  ;;  %v3709_v31 = vld [vmem:[#allocation2 + $0x1a4] sm:$0xf0] }
  0x1c   :  { %1146 = vmatpush.bf16.msrb.mxu1 %v3062_v28  ;;  %v3030_v36 = vor.u32 %v3764_v34, %v3029_v33  ;;  %v3644_v37 = vld [vmem:[%s4439_s3 + $0x20] sm:$0xff]  ;;  %v3102_v28 = vor.u32 %v3781_v20, %v3101_v18  ;;  %v3773_v34 = vld [vmem:[#allocation2 + $0x3a4] sm:$0xf0] }
  0x1d   :  { %v2741_v38 = vld [vmem:[#allocation2 + $0x100] sm:$0xf]  ;;  %271 = vmatpush.bf16.msra.mxu2 %v3644_v37  ;;  %v3063_v25 = vld [vmem:[#allocation2 + $0x3a0] sm:$0xf0]  ;;  %v2973_v6 = vld [vmem:[#allocation2 + $0x2c8] sm:$0xf] }
  0x1e   :  { %v3692_v39 = vld [vmem:[#allocation2 + $0x11c] sm:$0xf0]  ;;  %v3066_v33 = vor.u32 %v3768_v24, %v3063_v25  ;;  %v3760_v37 = vld [vmem:[#allocation2 + $0x344] sm:$0xf]  ;;  %v3677_v15 = vld [vmem:[#allocation2 + $0xa4] sm:$0xf0] }
  0x1f   :  { %v3652_v40 = vld [vmem:[%s4439_s3 + $0x60] sm:$0xff]  ;;  %1133 = vmatpush.bf16.msrb.mxu0 %v2774_v35  ;;  %v2742_v43 = vor.u32 %v3692_v39, %v2741_v38  ;;  %v2814_v39 = vor.u32 %v3709_v31, %v2813_v30  ;;  %v2941_v18 = vld [vmem:[#allocation2 + $0x288] sm:$0xf] }
  0x20   :  { %v2997_v41 = vld [vmem:[#allocation2 + $0x300] sm:$0xf]  ;;  %1147 = vmatpush.bf16.msrb.mxu1 %v3030_v36  ;;  %285 = vmatpush.bf16.msra.mxu3 %v3652_v40  ;;  %v3696_v35 = vld [vmem:[#allocation2 + $0x144] sm:$0xf]  ;;  %v3070_v40 = vor.u32 %v3773_v34, %v3069_v32  ;;  %v2909_v30 = vld [vmem:[#allocation2 + $0x248] sm:$0xf] }
  0x21   :  { %v3756_v42 = vld [vmem:[#allocation2 + $0x31c] sm:$0xf0]  ;;  %272 = vmatpush.bf16.msra.mxu2 %v3643_v45  ;;  %v2775_v36 = vld [vmem:[#allocation2 + $0x160] sm:$0xf0]  ;;  %v3733_v31 = vld [vmem:[#allocation2 + $0x264] sm:$0xf0] }
  0x22   :  { %v2998_v44 = vor.u32 %v3756_v42, %v2997_v41  ;;  %v2709_v46 = vld [vmem:[#allocation2 + $0xc0] sm:$0xf]  ;;  %v3031_v38 = vld [vmem:[#allocation2 + $0x360] sm:$0xf0]  ;;  %v2778_v41 = vor.u32 %v3696_v35, %v2775_v36  ;;  %v2781_v42 = vld [vmem:[#allocation2 + $0x148] sm:$0xf]  ;;  %v2910_v32 = vor.u32 %v3733_v31, %v2909_v30 }
  0x23   :  { %v3684_v47 = vld [vmem:[#allocation2 + $0xdc] sm:$0xf0]  ;;  %1134 = vmatpush.bf16.msrb.mxu0 %v2742_v43  ;;  %v3701_v43 = vld [vmem:[#allocation2 + $0x164] sm:$0xf0]  ;;  %v3034_v45 = vor.u32 %v3760_v37, %v3031_v38  ;;  %v2679_v10 = vld [vmem:[#allocation2 + $0xa0] sm:$0xf0] }
  0x24   :  { %v2965_v49 = vld [vmem:[#allocation2 + $0x2c0] sm:$0xf]  ;;  %v2710_v51 = vor.u32 %v3684_v47, %v2709_v46  ;;  %1148 = vmatpush.bf16.msrb.mxu1 %v2998_v44  ;;  %286 = vmatpush.bf16.msra.mxu3 %v3651_v48  ;;  %v3037_v44 = vld [vmem:[#allocation2 + $0x348] sm:$0xf]  ;;  %v3688_v47 = vld [vmem:[#allocation2 + $0x104] sm:$0xf] }
  0x25   :  { %v3748_v50 = vld [vmem:[#allocation2 + $0x2dc] sm:$0xf0]  ;;  %273 = vmatpush.bf16.msra.mxu2 %v3642_v53  ;;  %v3765_v46 = vld [vmem:[#allocation2 + $0x364] sm:$0xf0]  ;;  %v2743_v48 = vld [vmem:[#allocation2 + $0x120] sm:$0xf0] }
  0x26   :  { %v2966_v52 = vor.u32 %v3748_v50, %v2965_v49  ;;  %v2677_v54 = vld [vmem:[#allocation2 + $0x80] sm:$0xf]  ;;  %v3752_v49 = vld [vmem:[#allocation2 + $0x304] sm:$0xf]  ;;  %v2746_v53 = vor.u32 %v3688_v47, %v2743_v48  ;;  %v2621_v38 = vld [vmem:[#allocation2 + $0x8] sm:$0xf] }
  0x27   :  { %v3676_v55 = vld [vmem:[#allocation2 + $0x9c] sm:$0xf0]  ;;  %1135 = vmatpush.bf16.msrb.mxu0 %v2710_v51  ;;  %v2999_v50 = vld [vmem:[#allocation2 + $0x320] sm:$0xf0]  ;;  %v2782_v51 = vor.u32 %v3701_v43, %v2781_v42  ;;  %v2877_v42 = vld [vmem:[#allocation2 + $0x208] sm:$0xf] }
  0x28   :  { %v2933_v57 = vld [vmem:[#allocation2 + $0x280] sm:$0xf]  ;;  %v2678_v59 = vor.u32 %v3676_v55, %v2677_v54  ;;  %1149 = vmatpush.bf16.msrb.mxu1 %v2966_v52  ;;  %287 = vmatpush.bf16.msra.mxu3 %v3650_v56  ;;  %v3038_v52 = vor.u32 %v3765_v46, %v3037_v44  ;;  %v2749_v54 = vld [vmem:[#allocation2 + $0x108] sm:$0xf]  ;;  %v3002_v56 = vor.u32 %v3752_v49, %v2999_v50  ;;  %v3736_v11 = vld [vmem:[#allocation2 + $0x284] sm:$0xf] }
  0x29   :  { %v3740_v58 = vld [vmem:[#allocation2 + $0x29c] sm:$0xf0]  ;;  %274 = vmatpush.bf16.msra.mxu2 %v3641_v61  ;;  %v3693_v55 = vld [vmem:[#allocation2 + $0x124] sm:$0xf0]  ;;  %v3680_v61 = vld [vmem:[#allocation2 + $0xc4] sm:$0xf] }
  0x2a   :  { %v2934_v60 = vor.u32 %v3740_v58, %v2933_v57  ;;  %v2645_v62 = vld [vmem:[#allocation2 + $0x40] sm:$0xf]  ;;  %v3005_v57 = vld [vmem:[#allocation2 + $0x308] sm:$0xf]  ;;  %v3664_v21 = vld [vmem:[#allocation2 + $0x44] sm:$0xf] }
  0x2b   :  { %v3668_v63 = vld [vmem:[#allocation2 + $0x5c] sm:$0xf0]  ;;  %1136 = vmatpush.bf16.msrb.mxu0 %v2678_v59  ;;  %v3757_v58 = vld [vmem:[#allocation2 + $0x324] sm:$0xf0]  ;;  %v2750_v59 = vor.u32 %v3693_v55, %v2749_v54  ;;  %v2647_v22 = vld [vmem:[#allocation2 + $0x60] sm:$0xf0] }
  0x2c   :  { %v2901_v1 = vld [vmem:[#allocation2 + $0x240] sm:$0xf]  ;;  %v2646_v7 = vor.u32 %v3668_v63, %v2645_v62  ;;  %1150 = vmatpush.bf16.msrb.mxu1 %v2934_v60  ;;  %288 = vmatpush.bf16.msra.mxu3 %v3649_v0  ;;  %v3006_v60 = vor.u32 %v3757_v58, %v3005_v57  ;;  %v2711_v62 = vld [vmem:[#allocation2 + $0xe0] sm:$0xf0]  ;;  %v2650_v24 = vor.u32 %v3664_v21, %v2647_v22  ;;  %v3725_v43 = vld [vmem:[#allocation2 + $0x224] sm:$0xf0] }
  0x2d   :  { %v3732_v2 = vld [vmem:[#allocation2 + $0x25c] sm:$0xf0]  ;;  %v3744_v63 = vld [vmem:[#allocation2 + $0x2c4] sm:$0xf]  ;;  %v2714_v0 = vor.u32 %v3680_v61, %v2711_v62  ;;  %v2878_v44 = vor.u32 %v3725_v43, %v2877_v42  ;;  %v3713_v50 = vld [vmem:[#allocation2 + $0x1cc] sm:$0xf] }
  0x2e   :  { %v3640_v3 = vld [vmem:[%s4439_s3] sm:$0xff]  ;;  %v2902_v12 = vor.u32 %v3732_v2, %v2901_v1  ;;  %v2717_v2 = vld [vmem:[#allocation2 + $0xc8] sm:$0xf]  ;;  %v3103_v54 = vld [vmem:[#allocation2 + $0x3e8] sm:$0xf0] }
  0x2f   :  { %v2613_v4 = vld [vmem:[#allocation2] sm:$0xf]  ;;  %1137 = vmatpush.bf16.msrb.mxu0 %v2646_v7  ;;  %275 = vmatpush.bf16.msra.mxu2 %v3640_v3  ;;  %v2967_v1 = vld [vmem:[#allocation2 + $0x2e0] sm:$0xf0]  ;;  %v3685_v3 = vld [vmem:[#allocation2 + $0xe4] sm:$0xf0] }
  0x30   :  { %v3648_v8 = vld [vmem:[%s4439_s3 + $0x40] sm:$0xff]  ;;  %1151 = vmatpush.bf16.msrb.mxu1 %v2902_v12  ;;  %v2718_v5 = vor.u32 %v3685_v3, %v2717_v2  ;;  %v3749_v7 = vld [vmem:[#allocation2 + $0x2e4] sm:$0xf0]  ;;  %v2853_v55 = vld [vmem:[#allocation2 + $0x1d0] sm:$0xf] }
  0x31   :  { %v3660_v9 = vld [vmem:[#allocation2 + $0x1c] sm:$0xf0]  ;;  %289 = vmatpush.bf16.msra.mxu3 %v3648_v8  ;;  %v2974_v8 = vor.u32 %v3749_v7, %v2973_v6  ;;  %v2903_v25 = vld [vmem:[#allocation2 + $0x260] sm:$0xf0]  ;;  %v3782_v61 = vld [vmem:[#allocation2 + $0x3ec] sm:$0xf0] }
  0x32   :  { %v2869_v13 = vld [vmem:[#allocation2 + $0x200] sm:$0xf]  ;;  %v2614_v23 = vor.u32 %v3660_v9, %v2613_v4  ;;  %v2970_v4 = vor.u32 %v3744_v63, %v2967_v1  ;;  %v3672_v9 = vld [vmem:[#allocation2 + $0x84] sm:$0xf]  ;;  %v3705_v3 = vld [vmem:[#allocation2 + $0x18c] sm:$0xf] }
  0x33   :  { %v3724_v14 = vld [vmem:[#allocation2 + $0x21c] sm:$0xf0]  ;;  %1159 = vmatpush.bf16.msrb.mxu2 %v2842_v16  ;;  %v2682_v12 = vor.u32 %v3672_v9, %v2679_v10  ;;  %v2615_v34 = vld [vmem:[#allocation2 + $0x20] sm:$0xf0]  ;;  %v3071_v9 = vld [vmem:[#allocation2 + $0x3a8] sm:$0xf0] }
  0x34   :  { %v2870_v26 = vor.u32 %v3724_v14, %v2869_v13  ;;  %1138 = vmatpush.bf16.msrb.mxu0 %v2614_v23  ;;  %v2935_v13 = vld [vmem:[#allocation2 + $0x2a0] sm:$0xf0]  ;;  %v2685_v14 = vld [vmem:[#allocation2 + $0x88] sm:$0xf]  ;;  %v71_v47 = vld [vmem:[%s4438_s2] sm:$0x3] }
  0x35   :  { %1173 = vmatpush.bf16.msrb.mxu3 %v3098_v19  ;;  %v2938_v16 = vor.u32 %v3736_v11, %v2935_v13  ;;  %v2686_v17 = vor.u32 %v3677_v15, %v2685_v14  ;;  %v3741_v19 = vld [vmem:[#allocation2 + $0x2a4] sm:$0xf0]  ;;  %v3728_v23 = vld [vmem:[#allocation2 + $0x244] sm:$0xf]  ;;  %v73_v48 = vperm.slane %v71_v47, 0  ;;  %v74_v49 = vperm.slane %v71_v47, 1 }
  0x36   :  { %1152 = vmatpush.bf16.msrb.mxu1 %v2870_v26  ;;  %v2942_v20 = vor.u32 %v3741_v19, %v2941_v18  ;;  %v2653_v26 = vld [vmem:[#allocation2 + $0x48] sm:$0xf]  ;;  %v3720_v35 = vld [vmem:[#allocation2 + $0x204] sm:$0xf]  ;;  %v2821_v10 = vld [vmem:[#allocation2 + $0x190] sm:$0xf] }
  0x37   :  { %1160 = vmatpush.bf16.msrb.mxu2 %v2810_v29  ;;  %v2871_v37 = vld [vmem:[#allocation2 + $0x220] sm:$0xf0]  ;;  %v3710_v11 = vld [vmem:[#allocation2 + $0x1ac] sm:$0xf0]  ;;  %v3039_v21 = vld [vmem:[#allocation2 + $0x368] sm:$0xf0] }
  0x38   :  { %1187 = vmatpush.bf16.msra.mxu0 %v2846_v27  ;;  %v3669_v27 = vld [vmem:[#allocation2 + $0x64] sm:$0xf0]  ;;  %v3774_v13 = vld [vmem:[#allocation2 + $0x3ac] sm:$0xf0]  ;;  %v2822_v18 = vor.u32 %v3710_v11, %v2821_v10 }
  0x39   :  { %1174 = vmatpush.bf16.msrb.mxu3 %v3066_v33  ;;  %v2654_v29 = vor.u32 %v3669_v27, %v2653_v26  ;;  %v3656_v33 = vld [vmem:[#allocation2 + $0x4] sm:$0xf]  ;;  %v2789_v22 = vld [vmem:[#allocation2 + $0x150] sm:$0xf] }
  0x3a   :  { %1201 = vmatpush.bf16.msra.mxu1 %v3102_v28  ;;  %v2906_v28 = vor.u32 %v3728_v23, %v2903_v25  ;;  %v2618_v36 = vor.u32 %v3656_v33, %v2615_v34  ;;  %v3702_v23 = vld [vmem:[#allocation2 + $0x16c] sm:$0xf0]  ;;  %v3007_v33 = vld [vmem:[#allocation2 + $0x328] sm:$0xf0] }
  0x3b   :  { %1161 = vmatpush.bf16.msrb.mxu2 %v2778_v41  ;;  %v3766_v25 = vld [vmem:[#allocation2 + $0x36c] sm:$0xf0]  ;;  %v2790_v30 = vor.u32 %v3702_v23, %v2789_v22 }
  0x3c   :  { %1188 = vmatpush.bf16.msra.mxu0 %v2814_v39  ;;  %v3661_v39 = vld [vmem:[#allocation2 + $0x24] sm:$0xf0]  ;;  %v2757_v34 = vld [vmem:[#allocation2 + $0x110] sm:$0xf] }
  0x3d   :  { %1175 = vmatpush.bf16.msrb.mxu3 %v3034_v45  ;;  %v2622_v41 = vor.u32 %v3661_v39, %v2621_v38  ;;  %v3686_v47 = vld [vmem:[#allocation2 + $0xec] sm:$0xf0] }
  0x3e   :  { %1202 = vmatpush.bf16.msra.mxu1 %v3070_v40  ;;  %v2874_v40 = vor.u32 %v3720_v35, %v2871_v37  ;;  %v3694_v35 = vld [vmem:[#allocation2 + $0x12c] sm:$0xf0] }
  0x3f   :  { %1162 = vmatpush.bf16.msrb.mxu2 %v2746_v53  ;;  %v3777_v53 = vld [vmem:[#allocation2 + $0x3cc] sm:$0xf]  ;;  %v3758_v37 = vld [vmem:[#allocation2 + $0x32c] sm:$0xf0]  ;;  %v2758_v42 = vor.u32 %v3694_v35, %v2757_v34 }
  0x40   :  { %1189 = vmatpush.bf16.msra.mxu0 %v2782_v51  ;;  %v2847_v51 = vld [vmem:[#allocation2 + $0x1e8] sm:$0xf0]  ;;  %v3106_v2 = vor.u32 %v3777_v53, %v3103_v54  ;;  %v2917_v10 = vld [vmem:[#allocation2 + $0x250] sm:$0xf] }
  0x41   :  { %1176 = vmatpush.bf16.msrb.mxu3 %v3002_v56  ;;  %v2850_v1 = vor.u32 %v3713_v50, %v2847_v51  ;;  %v2687_v53 = vld [vmem:[#allocation2 + $0xa8] sm:$0xf0]  ;;  %v3734_v11 = vld [vmem:[#allocation2 + $0x26c] sm:$0xf0] }
  0x42   :  { %1203 = vmatpush.bf16.msra.mxu1 %v3038_v52  ;;  %v2885_v22 = vld [vmem:[#allocation2 + $0x210] sm:$0xf] }
  0x43   :  { %1163 = vmatpush.bf16.msrb.mxu2 %v2714_v0  ;;  %v3726_v23 = vld [vmem:[#allocation2 + $0x22c] sm:$0xf0] }
  0x44   :  { %1190 = vmatpush.bf16.msra.mxu0 %v2750_v59  ;;  %v3718_v59 = vld [vmem:[#allocation2 + $0x1ec] sm:$0xf0]  ;;  %v2886_v35 = vor.u32 %v3726_v23, %v2885_v22 }
  0x45   :  { %1177 = vmatpush.bf16.msrb.mxu3 %v2970_v4  ;;  %v2815_v4 = vld [vmem:[#allocation2 + $0x1a8] sm:$0xf0]  ;;  %v2854_v6 = vor.u32 %v3718_v59, %v2853_v55  ;;  %v3678_v59 = vld [vmem:[#allocation2 + $0xac] sm:$0xf0] }
  0x46   :  { %1204 = vmatpush.bf16.msra.mxu1 %v3006_v60  ;;  %v3109_v60 = vld [vmem:[#allocation2 + $0x3d0] sm:$0xf]  ;;  %v2818_v14 = vor.u32 %v3705_v3, %v2815_v4 }
  0x47   :  { %1164 = vmatpush.bf16.msrb.mxu2 %v2682_v12  ;;  %v3110_v7 = vor.u32 %v3782_v61, %v3109_v60  ;;  %v3077_v12 = vld [vmem:[#allocation2 + $0x390] sm:$0xf] }
  0x48   :  { %1191 = vmatpush.bf16.msra.mxu0 %v2718_v5  ;;  %v3078_v19 = vor.u32 %v3774_v13, %v3077_v12  ;;  %v2949_v60 = vld [vmem:[#allocation2 + $0x290] sm:$0xf]  ;;  %v3657_v12 = vld [vmem:[#allocation2 + $0xc] sm:$0xf] }
  0x49   :  { %1178 = vmatpush.bf16.msrb.mxu3 %v2938_v16  ;;  %v3697_v16 = vld [vmem:[#allocation2 + $0x14c] sm:$0xf]  ;;  %v3742_v61 = vld [vmem:[#allocation2 + $0x2ac] sm:$0xf0] }
  0x4a   :  { %1205 = vmatpush.bf16.msra.mxu1 %v2974_v8  ;;  %v3769_v8 = vld [vmem:[#allocation2 + $0x38c] sm:$0xf]  ;;  %v2950_v4 = vor.u32 %v3742_v61, %v2949_v60 }
  0x4b   :  { %1165 = vmatpush.bf16.msrb.mxu2 %v2650_v24  ;;  %v3074_v15 = vor.u32 %v3769_v8, %v3071_v9  ;;  %v3045_v24 = vld [vmem:[#allocation2 + $0x350] sm:$0xf] }
  0x4c   :  { %1192 = vmatpush.bf16.msra.mxu0 %v2686_v17  ;;  %v2783_v17 = vld [vmem:[#allocation2 + $0x168] sm:$0xf0]  ;;  %v3046_v31 = vor.u32 %v3766_v25, %v3045_v24  ;;  %v2661_v8 = vld [vmem:[#allocation2 + $0x50] sm:$0xf]  ;;  %v3714_v24 = vld [vmem:[#allocation2 + $0x1d4] sm:$0xf] }
  0x4d   :  { %1179 = vmatpush.bf16.msrb.mxu3 %v2906_v28  ;;  %v2786_v26 = vor.u32 %v3697_v16, %v2783_v17  ;;  %v3689_v28 = vld [vmem:[#allocation2 + $0x10c] sm:$0xf]  ;;  %v3670_v9 = vld [vmem:[#allocation2 + $0x6c] sm:$0xf0]  ;;  %v2855_v25 = vld [vmem:[#allocation2 + $0x1f0] sm:$0xf0] }
  0x4e   :  { %1206 = vmatpush.bf16.msra.mxu1 %v2942_v20  ;;  %v3761_v20 = vld [vmem:[#allocation2 + $0x34c] sm:$0xf] }
  0x4f   :  { %1166 = vmatpush.bf16.msrb.mxu2 %v2618_v36  ;;  %v3042_v27 = vor.u32 %v3761_v20, %v3039_v21  ;;  %v3013_v36 = vld [vmem:[#allocation2 + $0x310] sm:$0xf]  ;;  %v3721_v16 = vld [vmem:[#allocation2 + $0x20c] sm:$0xf] }
  0x50   :  { %1193 = vmatpush.bf16.msra.mxu0 %v2654_v29  ;;  %v2751_v29 = vld [vmem:[#allocation2 + $0x128] sm:$0xf0]  ;;  %v3014_v43 = vor.u32 %v3758_v37, %v3013_v36  ;;  %v2629_v20 = vld [vmem:[#allocation2 + $0x10] sm:$0xf]  ;;  %v2858_v36 = vor.u32 %v3714_v24, %v2855_v25  ;;  %v3674_v24 = vld [vmem:[#allocation2 + $0x94] sm:$0xf] }
  0x51   :  { %1180 = vmatpush.bf16.msrb.mxu3 %v2874_v40  ;;  %v2754_v38 = vor.u32 %v3689_v28, %v2751_v29  ;;  %v3681_v40 = vld [vmem:[#allocation2 + $0xcc] sm:$0xf]  ;;  %v3662_v21 = vld [vmem:[#allocation2 + $0x2c] sm:$0xf0]  ;;  %v2861_v28 = vld [vmem:[#allocation2 + $0x1d8] sm:$0xf] }
  0x52   :  { %1207 = vmatpush.bf16.msra.mxu1 %v2910_v32  ;;  %v3753_v32 = vld [vmem:[#allocation2 + $0x30c] sm:$0xf]  ;;  %v2630_v34 = vor.u32 %v3662_v21, %v2629_v20  ;;  %v2989_v20 = vld [vmem:[#allocation2 + $0x2d8] sm:$0xf]  ;;  %v2695_v25 = vld [vmem:[#allocation2 + $0xb0] sm:$0xf0] }
  0x53   :  { %v3010_v39 = vor.u32 %v3753_v32, %v3007_v33  ;;  %v2879_v17 = vld [vmem:[#allocation2 + $0x228] sm:$0xf0]  ;;  %v3117_v32 = vld [vmem:[#allocation2 + $0x3d8] sm:$0xf] }
  0x54   :  { %1194 = vmatpush.bf16.msra.mxu0 %v2622_v41  ;;  %v2719_v41 = vld [vmem:[#allocation2 + $0xe8] sm:$0xf0]  ;;  %v3783_v33 = vld [vmem:[#allocation2 + $0x3f4] sm:$0xf0] }
  0x55   :  { %v2722_v50 = vor.u32 %v3681_v40, %v2719_v41  ;;  %v3118_v41 = vor.u32 %v3783_v33, %v3117_v32  ;;  %v3751_v21 = vld [vmem:[#allocation2 + $0x2f4] sm:$0xf0] }
  0x56   :  { %1208 = vmatpush.bf16.msra.mxu1 %v2878_v44  ;;  %v3745_v44 = vld [vmem:[#allocation2 + $0x2cc] sm:$0xf]  ;;  %v2957_v32 = vld [vmem:[#allocation2 + $0x298] sm:$0xf] }
  0x57   :  { %v3743_v33 = vld [vmem:[#allocation2 + $0x2b4] sm:$0xf0] }
  0x93   :  { %v115_v45 = vpop.f32.mrf.mxu0 }
  0x94   :  { %v129_v46 = vpop.f32.mrf.mxu1  ;;  %v116_v56 = vadd.f32 %v115_v45, %v73_v48  ;;  %v2975_v45 = vld [vmem:[#allocation2 + $0x2e8] sm:$0xf0] }
  0x95   :  { %v130_v62 = vadd.f32 %v129_v46, %v74_v49  ;;  %v2725_v46 = vld [vmem:[#allocation2 + $0xd0] sm:$0xf]  ;;  %v2978_v51 = vor.u32 %v3745_v44, %v2975_v45  ;;  %v2829_v44 = vld [vmem:[#allocation2 + $0x198] sm:$0xf] }
  0x96   :  { %v2726_v54 = vor.u32 %v3686_v47, %v2725_v46  ;;  %v3711_v45 = vld [vmem:[#allocation2 + $0x1b4] sm:$0xf0] }
  0x97   :  { %v3085_v46 = vld [vmem:[#allocation2 + $0x398] sm:$0xf] }
  0x98   :  { %v3775_v47 = vld [vmem:[#allocation2 + $0x3b4] sm:$0xf0] }
  0x9b   :  { %v117_v52 = vpop.f32.mrf.mxu0 }
  0x9c   :  { %v118_v57 = vadd.f32 %v117_v52, %v73_v48  ;;  %v131_v58 = vpop.f32.mrf.mxu1  ;;  %v2981_v48 = vld [vmem:[#allocation2 + $0x2d0] sm:$0xf]  ;;  %v3673_v52 = vld [vmem:[#allocation2 + $0x8c] sm:$0xf] }
  0x9d   :  { %v132_v63 = vadd.f32 %v131_v58, %v74_v49  ;;  %v3750_v49 = vld [vmem:[#allocation2 + $0x2ec] sm:$0xf0] }
  0x9e   :  { %v4135_v0 = vpack.c.bf16 %v118_v57, %v116_v56  ;;  %v2982_v55 = vor.u32 %v3750_v49, %v2981_v48  ;;  %v3737_v56 = vld [vmem:[#allocation2 + $0x28c] sm:$0xf]  ;;  %v2693_v58 = vld [vmem:[#allocation2 + $0x90] sm:$0xf] }
  0x9f   :  { %v4137_v5 = vpack.c.bf16 %v132_v63, %v130_v62  ;;  %v2943_v57 = vld [vmem:[#allocation2 + $0x2a8] sm:$0xf0]  ;;  %v2690_v62 = vor.u32 %v3673_v52, %v2687_v53  ;;  %v2694_v3 = vor.u32 %v3678_v59, %v2693_v58  ;;  %v2830_v52 = vor.u32 %v3711_v45, %v2829_v44  ;;  %v3053_v58 = vld [vmem:[#allocation2 + $0x358] sm:$0xf] }
  0xa0   :  { %276 = vmatmul.bf16.vlgmr.msra.gmra.mxu2 %v4135_v0  ;;  %1139 = vmatmul.bf16.vlgmr.msrb.gmra.mxu0 %v4135_v0  ;;  %v2946_v63 = vor.u32 %v3737_v56, %v2943_v57  ;;  %v3086_v53 = vor.u32 %v3775_v47, %v3085_v46  ;;  %v2797_v56 = vld [vmem:[#allocation2 + $0x158] sm:$0xf] }
  0xa1   :  { %290 = vmatmul.bf16.vlgmr.msra.gmra.mxu3 %v4137_v5  ;;  %1153 = vmatmul.bf16.vlgmr.msrb.gmra.mxu1 %v4137_v5  ;;  %v3703_v57 = vld [vmem:[#allocation2 + $0x174] sm:$0xf0] }
  0xa2   :  { %1215 = vmatpush.bf16.msra.mxu2 %v2850_v1  ;;  %1229 = vmatpush.bf16.msra.mxu3 %v3106_v2  ;;  %v3665_v1 = vld [vmem:[#allocation2 + $0x4c] sm:$0xf]  ;;  %v3767_v59 = vld [vmem:[#allocation2 + $0x374] sm:$0xf0] }
  0xa3   :  { %1243 = vmatpush.bf16.msrb.mxu0 %v2854_v6  ;;  %1257 = vmatpush.bf16.msrb.mxu1 %v3110_v7  ;;  %v2655_v2 = vld [vmem:[#allocation2 + $0x68] sm:$0xf0]  ;;  %v2925_v44 = vld [vmem:[#allocation2 + $0x258] sm:$0xf] }
  0xa4   :  { %v3729_v6 = vld [vmem:[#allocation2 + $0x24c] sm:$0xf]  ;;  %v2658_v13 = vor.u32 %v3665_v1, %v2655_v2  ;;  %v2798_v1 = vor.u32 %v3703_v57, %v2797_v56  ;;  %v3054_v2 = vor.u32 %v3767_v59, %v3053_v58  ;;  %v3735_v45 = vld [vmem:[#allocation2 + $0x274] sm:$0xf0]  ;;  %v3715_v58 = vld [vmem:[#allocation2 + $0x1dc] sm:$0xf] }
  0xa5   :  { %v2911_v7 = vld [vmem:[#allocation2 + $0x268] sm:$0xf0]  ;;  %v2893_v56 = vld [vmem:[#allocation2 + $0x218] sm:$0xf]  ;;  %v2863_v59 = vld [vmem:[#allocation2 + $0x1f8] sm:$0xf0] }
  0xa6   :  { %1216 = vmatpush.bf16.msra.mxu2 %v2818_v14  ;;  %1230 = vmatpush.bf16.msra.mxu3 %v3074_v15  ;;  %v2914_v14 = vor.u32 %v3729_v6, %v2911_v7  ;;  %v2623_v15 = vld [vmem:[#allocation2 + $0x28] sm:$0xf0]  ;;  %v2765_v6 = vld [vmem:[#allocation2 + $0x118] sm:$0xf] }
  0xa7   :  { %1244 = vmatpush.bf16.msrb.mxu0 %v2822_v18  ;;  %1258 = vmatpush.bf16.msrb.mxu1 %v3078_v19  ;;  %v2662_v18 = vor.u32 %v3670_v9, %v2661_v8  ;;  %v2918_v19 = vor.u32 %v3734_v11, %v2917_v10  ;;  %v2626_v29 = vor.u32 %v3657_v12, %v2623_v15  ;;  %v3695_v7 = vld [vmem:[#allocation2 + $0x134] sm:$0xf0]  ;;  %v3682_v12 = vld [vmem:[#allocation2 + $0xd4] sm:$0xf] }
  0xa8   :  { %v3021_v8 = vld [vmem:[#allocation2 + $0x318] sm:$0xf] }
  0xa9   :  { %v3759_v9 = vld [vmem:[#allocation2 + $0x334] sm:$0xf0] }
  0xaa   :  { %1217 = vmatpush.bf16.msra.mxu2 %v2786_v26  ;;  %1231 = vmatpush.bf16.msra.mxu3 %v3042_v27  ;;  %v3778_v26 = vld [vmem:[#allocation2 + $0x3d4] sm:$0xf]  ;;  %v3022_v15 = vor.u32 %v3759_v9, %v3021_v8  ;;  %v3727_v57 = vld [vmem:[#allocation2 + $0x234] sm:$0xf0]  ;;  %v3771_v8 = vld [vmem:[#allocation2 + $0x39c] sm:$0xf] }
  0xab   :  { %1245 = vmatpush.bf16.msrb.mxu0 %v2790_v30  ;;  %1259 = vmatpush.bf16.msrb.mxu1 %v3046_v31  ;;  %v3111_v27 = vld [vmem:[#allocation2 + $0x3f0] sm:$0xf0]  ;;  %v2882_v30 = vor.u32 %v3721_v16, %v2879_v17  ;;  %v3719_v31 = vld [vmem:[#allocation2 + $0x1f4] sm:$0xf0]  ;;  %v3087_v9 = vld [vmem:[#allocation2 + $0x3b8] sm:$0xf0] }
  0xac   :  { %v3114_v37 = vor.u32 %v3778_v26, %v3111_v27  ;;  %v2862_v40 = vor.u32 %v3719_v31, %v2861_v28  ;;  %v3746_v16 = vld [vmem:[#allocation2 + $0x2d4] sm:$0xf]  ;;  %v2990_v27 = vor.u32 %v3751_v21, %v2989_v20  ;;  %v3679_v31 = vld [vmem:[#allocation2 + $0xb4] sm:$0xf0]  ;;  %v3755_v20 = vld [vmem:[#allocation2 + $0x31c] sm:$0xf] }
  0xad   :  { %v2983_v17 = vld [vmem:[#allocation2 + $0x2f0] sm:$0xf0]  ;;  %v3023_v21 = vld [vmem:[#allocation2 + $0x338] sm:$0xf0] }
  0xae   :  { %1218 = vmatpush.bf16.msra.mxu2 %v2754_v38  ;;  %1232 = vmatpush.bf16.msra.mxu3 %v3010_v39  ;;  %v3706_v38 = vld [vmem:[#allocation2 + $0x194] sm:$0xf]  ;;  %v2986_v23 = vor.u32 %v3746_v16, %v2983_v17 }
  0xaf   :  { %1246 = vmatpush.bf16.msrb.mxu0 %v2758_v42  ;;  %1260 = vmatpush.bf16.msrb.mxu1 %v3014_v43  ;;  %v2823_v39 = vld [vmem:[#allocation2 + $0x1b0] sm:$0xf0] }
  0xb0   :  { %1167 = vmatmul.bf16.vlgmr.msrb.gmra.mxu2 %v4135_v0  ;;  %1195 = vmatmul.bf16.vlgmr.msra.gmra.mxu0 %v4135_v0  ;;  %v3770_v42 = vld [vmem:[#allocation2 + $0x394] sm:$0xf]  ;;  %v2826_v48 = vor.u32 %v3706_v38, %v2823_v39  ;;  %v2958_v39 = vor.u32 %v3743_v33, %v2957_v32  ;;  %v3739_v32 = vld [vmem:[#allocation2 + $0x29c] sm:$0xf] }
  0xb1   :  { %1181 = vmatmul.bf16.vlgmr.msrb.gmra.mxu3 %v4137_v5  ;;  %1209 = vmatmul.bf16.vlgmr.msra.gmra.mxu1 %v4137_v5  ;;  %v3079_v43 = vld [vmem:[#allocation2 + $0x3b0] sm:$0xf0]  ;;  %v2959_v33 = vld [vmem:[#allocation2 + $0x2b8] sm:$0xf0] }
  0xb2   :  { %1219 = vmatpush.bf16.msra.mxu2 %v2722_v50  ;;  %1233 = vmatpush.bf16.msra.mxu3 %v2978_v51  ;;  %v3082_v49 = vor.u32 %v3770_v42, %v3079_v43  ;;  %v3698_v50 = vld [vmem:[#allocation2 + $0x154] sm:$0xf]  ;;  %v2669_v42 = vld [vmem:[#allocation2 + $0x58] sm:$0xf] }
  0xb3   :  { %1247 = vmatpush.bf16.msrb.mxu0 %v2726_v54  ;;  %1261 = vmatpush.bf16.msrb.mxu1 %v2982_v55  ;;  %v2791_v51 = vld [vmem:[#allocation2 + $0x170] sm:$0xf0]  ;;  %v3671_v43 = vld [vmem:[#allocation2 + $0x74] sm:$0xf0] }
  0xb4   :  { %v3762_v54 = vld [vmem:[#allocation2 + $0x354] sm:$0xf]  ;;  %v2794_v60 = vor.u32 %v3698_v50, %v2791_v51  ;;  %v2670_v51 = vor.u32 %v3671_v43, %v2669_v42  ;;  %v3659_v42 = vld [vmem:[#allocation2 + $0x1c] sm:$0xf] }
  0xb5   :  { %v3047_v55 = vld [vmem:[#allocation2 + $0x370] sm:$0xf0]  ;;  %v2639_v43 = vld [vmem:[#allocation2 + $0x38] sm:$0xf0] }
  0xb6   :  { %1220 = vmatpush.bf16.msra.mxu2 %v2690_v62  ;;  %1234 = vmatpush.bf16.msra.mxu3 %v2946_v63  ;;  %v3050_v61 = vor.u32 %v3762_v54, %v3047_v55  ;;  %v3690_v62 = vld [vmem:[#allocation2 + $0x114] sm:$0xf]  ;;  %v2637_v54 = vld [vmem:[#allocation2 + $0x18] sm:$0xf] }
  0xb7   :  { %1248 = vmatpush.bf16.msrb.mxu0 %v2694_v3  ;;  %1262 = vmatpush.bf16.msrb.mxu1 %v2950_v4  ;;  %v2759_v63 = vld [vmem:[#allocation2 + $0x130] sm:$0xf0]  ;;  %v3663_v55 = vld [vmem:[#allocation2 + $0x34] sm:$0xf0] }
  0xb8   :  { %v3754_v3 = vld [vmem:[#allocation2 + $0x314] sm:$0xf]  ;;  %v2762_v10 = vor.u32 %v3690_v62, %v2759_v63 }
  0xb9   :  { %v3015_v4 = vld [vmem:[#allocation2 + $0x330] sm:$0xf0] }
  0xba   :  { %1221 = vmatpush.bf16.msra.mxu2 %v2658_v13  ;;  %1235 = vmatpush.bf16.msra.mxu3 %v2914_v14  ;;  %v3018_v11 = vor.u32 %v3754_v3, %v3015_v4  ;;  %v2727_v13 = vld [vmem:[#allocation2 + $0xf0] sm:$0xf0]  ;;  %v2766_v14 = vor.u32 %v3695_v7, %v2765_v6  ;;  %v2866_v3 = vor.u32 %v3715_v58, %v2863_v59  ;;  %v3707_v6 = vld [vmem:[#allocation2 + $0x19c] sm:$0xf] }
  0xbb   :  { %1249 = vmatpush.bf16.msrb.mxu0 %v2662_v18  ;;  %1263 = vmatpush.bf16.msrb.mxu1 %v2918_v19  ;;  %v2733_v18 = vld [vmem:[#allocation2 + $0xd8] sm:$0xf]  ;;  %v2730_v22 = vor.u32 %v3682_v12, %v2727_v13  ;;  %v3738_v28 = vld [vmem:[#allocation2 + $0x294] sm:$0xf]  ;;  %v2831_v7 = vld [vmem:[#allocation2 + $0x1b8] sm:$0xf0] }
  0xbc   :  { %v3687_v19 = vld [vmem:[#allocation2 + $0xf4] sm:$0xf0]  ;;  %v3722_v50 = vld [vmem:[#allocation2 + $0x214] sm:$0xf]  ;;  %v3699_v12 = vld [vmem:[#allocation2 + $0x15c] sm:$0xf] }
  0xbd   :  { %v2734_v26 = vor.u32 %v3687_v19, %v2733_v18  ;;  %v2799_v13 = vld [vmem:[#allocation2 + $0x178] sm:$0xf0] }
  0xbe   :  { %1222 = vmatpush.bf16.msra.mxu2 %v2626_v29  ;;  %1236 = vmatpush.bf16.msra.mxu3 %v2882_v30  ;;  %v2951_v29 = vld [vmem:[#allocation2 + $0x2b0] sm:$0xf0]  ;;  %v2701_v30 = vld [vmem:[#allocation2 + $0x98] sm:$0xf]  ;;  %v2802_v16 = vor.u32 %v3699_v12, %v2799_v13  ;;  %v3691_v18 = vld [vmem:[#allocation2 + $0x11c] sm:$0xf] }
  0xbf   :  { %1250 = vmatpush.bf16.msrb.mxu0 %v2630_v34  ;;  %1264 = vmatpush.bf16.msrb.mxu1 %v2886_v35  ;;  %v2698_v34 = vor.u32 %v3674_v24, %v2695_v25  ;;  %v2954_v35 = vor.u32 %v3738_v28, %v2951_v29  ;;  %v2702_v38 = vor.u32 %v3679_v31, %v2701_v30  ;;  %v2767_v19 = vld [vmem:[#allocation2 + $0x138] sm:$0xf0] }
  0xc0   :  { %v3683_v24 = vld [vmem:[#allocation2 + $0xdc] sm:$0xf] }
  0xc1   :  { %1223 = vmatmul.bf16.vlgmr.msra.gmra.mxu2 %v4135_v0  ;;  %1237 = vmatmul.bf16.vlgmr.msra.gmra.mxu3 %v4137_v5  ;;  %v2735_v25 = vld [vmem:[#allocation2 + $0xf8] sm:$0xf0] }
  0xc2   :  { %1271 = vmatpush.bf16.msrb.mxu2 %v2858_v36  ;;  %1285 = vmatpush.bf16.msrb.mxu3 %v3114_v37  ;;  %v3666_v36 = vld [vmem:[#allocation2 + $0x54] sm:$0xf]  ;;  %v2738_v28 = vor.u32 %v3683_v24, %v2735_v25  ;;  %v3675_v30 = vld [vmem:[#allocation2 + $0x9c] sm:$0xf] }
  0xc3   :  { %1299 = vmatpush.bf16.msra.mxu0 %v2862_v40  ;;  %1313 = vmatpush.bf16.msra.mxu1 %v3118_v41  ;;  %v2663_v37 = vld [vmem:[#allocation2 + $0x70] sm:$0xf0]  ;;  %v2703_v31 = vld [vmem:[#allocation2 + $0xb8] sm:$0xf0] }
  0xc4   :  { %1251 = vmatmul.bf16.vlgmr.msrb.gmra.mxu0 %v4135_v0  ;;  %1265 = vmatmul.bf16.vlgmr.msrb.gmra.mxu1 %v4137_v5  ;;  %v3730_v40 = vld [vmem:[#allocation2 + $0x254] sm:$0xf]  ;;  %v2666_v46 = vor.u32 %v3666_v36, %v2663_v37  ;;  %v3667_v36 = vld [vmem:[#allocation2 + $0x5c] sm:$0xf] }
  0xc5   :  { %v2919_v41 = vld [vmem:[#allocation2 + $0x270] sm:$0xf0]  ;;  %v2671_v37 = vld [vmem:[#allocation2 + $0x78] sm:$0xf0] }
  0xc6   :  { %1272 = vmatpush.bf16.msrb.mxu2 %v2826_v48  ;;  %1286 = vmatpush.bf16.msrb.mxu3 %v3082_v49  ;;  %v2922_v47 = vor.u32 %v3730_v40, %v2919_v41  ;;  %v3658_v48 = vld [vmem:[#allocation2 + $0x14] sm:$0xf]  ;;  %v2674_v40 = vor.u32 %v3667_v36, %v2671_v37  ;;  %v3847_v36 = vld [vmem:[#allocation4 + $0x1f4] sm:$0xf0]  ;;  %v3301_v37 = vld [vmem:[#allocation4 + $0x160] sm:$0xf] }
  0xc7   :  { %1300 = vmatpush.bf16.msra.mxu0 %v2830_v52  ;;  %1314 = vmatpush.bf16.msra.mxu1 %v3086_v53  ;;  %v2631_v49 = vld [vmem:[#allocation2 + $0x30] sm:$0xf0]  ;;  %v2926_v52 = vor.u32 %v3735_v45, %v2925_v44  ;;  %v3723_v44 = vld [vmem:[#allocation2 + $0x21c] sm:$0xf] }
  0xc8   :  { %v2887_v53 = vld [vmem:[#allocation2 + $0x230] sm:$0xf0]  ;;  %v2634_v62 = vor.u32 %v3658_v48, %v2631_v49  ;;  %v2895_v45 = vld [vmem:[#allocation2 + $0x238] sm:$0xf0]  ;;  %v3930_v48 = vld [vmem:[%s4440_s4] ss:$0 sm:$0xff] }
  0xc9   :  { %v2890_v63 = vor.u32 %v3722_v50, %v2887_v53 }
  0xca   :  { %1273 = vmatpush.bf16.msrb.mxu2 %v2794_v60  ;;  %1287 = vmatpush.bf16.msrb.mxu3 %v3050_v61  ;;  %v3779_v60 = vld [vmem:[#allocation2 + $0x3dc] sm:$0xf] }
  0xcb   :  { %1301 = vmatpush.bf16.msra.mxu0 %v2798_v1  ;;  %1315 = vmatpush.bf16.msra.mxu1 %v3054_v2  ;;  %v3119_v61 = vld [vmem:[#allocation2 + $0x3f8] sm:$0xf0]  ;;  %v2638_v1 = vor.u32 %v3663_v55, %v2637_v54  ;;  %v2894_v2 = vor.u32 %v3727_v57, %v2893_v56 }
  0xcc   :  { %v3122_v4 = vor.u32 %v3779_v60, %v3119_v61 }
  0xce   :  { %1274 = vmatpush.bf16.msrb.mxu2 %v2762_v10  ;;  %1288 = vmatpush.bf16.msrb.mxu3 %v3018_v11  ;;  %v2834_v10 = vor.u32 %v3707_v6, %v2831_v7  ;;  %v3090_v11 = vor.u32 %v3771_v8, %v3087_v9  ;;  %v3998_v6 = vmov 0  }
  0xcf   :  { %1302 = vmatpush.bf16.msra.mxu0 %v2766_v14  ;;  %1316 = vmatpush.bf16.msra.mxu1 %v3022_v15  ;;  %v3763_v14 = vld [vmem:[#allocation2 + $0x35c] sm:$0xf] }
  0xd0   :  { %v3055_v15 = vld [vmem:[#allocation2 + $0x378] sm:$0xf0]  ;;  %3923 = vset.pattern.permute.xlu0 %v3998_v6  ;;  %3924 = vset.pattern.permute.xlu1 %v3998_v6  ;;  %v4000_v6 = vmov 2  }
  0xd1   :  { %v3058_v17 = vor.u32 %v3763_v14, %v3055_v15 }
  0xd2   :  { %1275 = vmatpush.bf16.msrb.mxu2 %v2730_v22  ;;  %1289 = vmatpush.bf16.msrb.mxu3 %v2986_v23  ;;  %v2770_v22 = vor.u32 %v3691_v18, %v2767_v19  ;;  %v3026_v23 = vor.u32 %v3755_v20, %v3023_v21 }
  0xd3   :  { %1303 = vmatpush.bf16.msra.mxu0 %v2734_v26  ;;  %1317 = vmatpush.bf16.msra.mxu1 %v2990_v27  ;;  %v3747_v26 = vld [vmem:[#allocation2 + $0x2dc] sm:$0xf] }
  0xd4   :  { %v2991_v27 = vld [vmem:[#allocation2 + $0x2f8] sm:$0xf0] }
  0xd5   :  { %v2994_v29 = vor.u32 %v3747_v26, %v2991_v27 }
  0xd6   :  { %1276 = vmatpush.bf16.msrb.mxu2 %v2698_v34  ;;  %1290 = vmatpush.bf16.msrb.mxu3 %v2954_v35  ;;  %v2706_v34 = vor.u32 %v3675_v30, %v2703_v31  ;;  %v2962_v35 = vor.u32 %v3739_v32, %v2959_v33  ;;  %v3999_v31 = vmov 3   ;;  %v3309_v32 = vld [vmem:[#allocation4 + $0x170] sm:$0xf]  ;;  %v3831_v33 = vld [vmem:[#allocation4 + $0x174] sm:$0xf0] }
  0xd7   :  { %1304 = vmatpush.bf16.msra.mxu0 %v2702_v38  ;;  %1318 = vmatpush.bf16.msra.mxu1 %v2958_v39  ;;  %v3731_v38 = vld [vmem:[#allocation2 + $0x25c] sm:$0xf] }
  0xd8   :  { %v2927_v39 = vld [vmem:[#allocation2 + $0x278] sm:$0xf0] }
  0xd9   :  { %v2930_v41 = vor.u32 %v3731_v38, %v2927_v39  ;;  %v3829_v38 = vld [vmem:[#allocation4 + $0x164] sm:$0xf0] }
  0xda   :  { %1277 = vmatpush.bf16.msrb.mxu2 %v2666_v46  ;;  %1291 = vmatpush.bf16.msrb.mxu3 %v2922_v47  ;;  %v2642_v46 = vor.u32 %v3659_v42, %v2639_v43  ;;  %v2898_v47 = vor.u32 %v3723_v44, %v2895_v45  ;;  %v3302_v42 = vor.u32 %v3829_v38, %v3301_v37  ;;  %v3293_v44 = vld [vmem:[#allocation4 + $0x150] sm:$0xf]  ;;  %v3827_v45 = vld [vmem:[#allocation4 + $0x154] sm:$0xf0] }
  0xdb   :  { %1305 = vmatpush.bf16.msra.mxu0 %v2670_v51  ;;  %1319 = vmatpush.bf16.msra.mxu1 %v2926_v52  ;;  %v3791_v37 = vld [vmem:[#allocation4 + $0x34] sm:$0xf0]  ;;  %v3213_v38 = vld [vmem:[#allocation4 + $0xb0] sm:$0xf] }
  0xde   :  { %1278 = vmatpush.bf16.msrb.mxu2 %v2634_v62  ;;  %1292 = vmatpush.bf16.msrb.mxu3 %v2890_v63 }
  0xdf   :  { %1306 = vmatpush.bf16.msra.mxu0 %v2638_v1  ;;  %1320 = vmatpush.bf16.msra.mxu1 %v2894_v2 }
  0xe1   :  { %1279 = vmatmul.bf16.vlgmr.msrb.gmra.mxu2 %v4135_v0  ;;  %1293 = vmatmul.bf16.vlgmr.msrb.gmra.mxu3 %v4137_v5 }
  0xe2   :  { %1327 = vmatpush.bf16.msra.mxu2 %v2866_v3  ;;  %1341 = vmatpush.bf16.msra.mxu3 %v3122_v4  ;;  %v3997_v4 = vmov 1  }
  0xe3   :  { %1307 = vmatmul.bf16.vlgmr.msra.gmra.mxu0 %v4135_v0  ;;  %1321 = vmatmul.bf16.vlgmr.msra.gmra.mxu1 %v4137_v5 }
  0xe4   :  { %3922 = vset.pattern.permute.xlu2 %v3997_v4 }
  0xe6   :  { %1328 = vmatpush.bf16.msra.mxu2 %v2834_v10  ;;  %1342 = vmatpush.bf16.msra.mxu3 %v3090_v11 }
  0xea   :  { %1329 = vmatpush.bf16.msra.mxu2 %v2802_v16  ;;  %1343 = vmatpush.bf16.msra.mxu3 %v3058_v17 }
  0xee   :  { %1330 = vmatpush.bf16.msra.mxu2 %v2770_v22  ;;  %1344 = vmatpush.bf16.msra.mxu3 %v3026_v23 }
  0xf2   :  { %1331 = vmatpush.bf16.msra.mxu2 %v2738_v28  ;;  %1345 = vmatpush.bf16.msra.mxu3 %v2994_v29 }
  0xf6   :  { %1332 = vmatpush.bf16.msra.mxu2 %v2706_v34  ;;  %1346 = vmatpush.bf16.msra.mxu3 %v2962_v35  ;;  %v3373_v34 = vld [vmem:[#allocation4 + $0x1f0] sm:$0xf]  ;;  %v3310_v35 = vor.u32 %v3831_v33, %v3309_v32 }
  0xf7   :  { %v3374_v39 = vor.u32 %v3847_v36, %v3373_v34  ;;  %v3835_v34 = vld [vmem:[#allocation4 + $0x194] sm:$0xf0]  ;;  %v3149_v36 = vld [vmem:[#allocation4 + $0x30] sm:$0xf] }
  0xfa   :  { %1333 = vmatpush.bf16.msra.mxu2 %v2674_v40  ;;  %1347 = vmatpush.bf16.msra.mxu3 %v2930_v41  ;;  %v3365_v40 = vld [vmem:[#allocation4 + $0x1e0] sm:$0xf]  ;;  %v3845_v41 = vld [vmem:[#allocation4 + $0x1e4] sm:$0xf0] }
  0xfb   :  { %v3366_v43 = vor.u32 %v3845_v41, %v3365_v40 }
  0xfe   :  { %1334 = vmatpush.bf16.msra.mxu2 %v2642_v46  ;;  %1348 = vmatpush.bf16.msra.mxu3 %v2898_v47  ;;  %v3357_v46 = vld [vmem:[#allocation4 + $0x1d0] sm:$0xf]  ;;  %v3843_v47 = vld [vmem:[#allocation4 + $0x1d4] sm:$0xf0] }
 0x101   :  { %1335 = vmatmul.bf16.vlgmr.msra.gmra.mxu2 %v4135_v0  ;;  %1349 = vmatmul.bf16.vlgmr.msra.gmra.mxu3 %v4137_v5 }
 0x102   :  { %2319 = vmatpush.bf16.msrb.mxu2 %v3310_v35  ;;  %2333 = vmatpush.bf16.msrb.mxu3 %v3374_v39  ;;  %v3807_v39 = vld [vmem:[#allocation4 + $0xb4] sm:$0xf0] }
 0x106   :  { %2320 = vmatpush.bf16.msrb.mxu2 %v3302_v42  ;;  %2334 = vmatpush.bf16.msrb.mxu3 %v3366_v43  ;;  %v3253_v42 = vld [vmem:[#allocation4 + $0x100] sm:$0xf]  ;;  %v3817_v43 = vld [vmem:[#allocation4 + $0x104] sm:$0xf0] }
 0x11d   :  { %v4177_v33 = vpop.f32.mrf.mxu0 }
 0x123   :  { %v277_v49 = vpop.f32.mrf.mxu2 }
 0x124   :  { %v278_v50 = vadd.f32 %v3930_v48, %v277_v49  ;;  %v291_v51 = vpop.f32.mrf.mxu3  ;;  %v3285_v49 = vld [vmem:[#allocation4 + $0x140] sm:$0xf] }
 0x126   :  { %v292_v52 = vadd.f32 %v291_v51, %v278_v50  ;;  %v3825_v50 = vld [vmem:[#allocation4 + $0x144] sm:$0xf0]  ;;  %v3358_v51 = vor.u32 %v3843_v47, %v3357_v46  ;;  %v3565_v47 = vld [vmem:[#allocation4 + $0x370] sm:$0xf] }
 0x127   :  { %v3833_v46 = vld [vmem:[#allocation4 + $0x184] sm:$0xf0] }
 0x128   :  { %v297_v53 = vsel %vm296_vm1, %v292_v52, -inf  ;;  %2335 = vmatpush.bf16.msrb.mxu3 %v3358_v51  ;;  %v4181_v51 = vpop.f32.mrf.mxu1 }
 0x129   :  { %298 = vmax.xlane.f32.xlu0 %v297_v53  ;;  %v3799_v53 = vld [vmem:[#allocation4 + $0x74] sm:$0xf0] }
 0x12b   :  { %v279_v54 = vpop.f32.mrf.mxu2 }
 0x12c   :  { %v280_v55 = vadd.f32 %v3930_v48, %v279_v54  ;;  %v293_v56 = vpop.f32.mrf.mxu3  ;;  %v3294_v48 = vor.u32 %v3827_v45, %v3293_v44  ;;  %v3245_v54 = vld [vmem:[#allocation4 + $0xf0] sm:$0xf]  ;;  %v3150_v44 = vor.u32 %v3791_v37, %v3149_v36  ;;  %v3317_v45 = vld [vmem:[#allocation4 + $0x180] sm:$0xf]  ;;  %v3803_v37 = vld [vmem:[#allocation4 + $0x94] sm:$0xf0] }
 0x12d   :  { %v3197_v36 = vld [vmem:[#allocation4 + $0x90] sm:$0xf] }
 0x12e   :  { %v294_v57 = vadd.f32 %v293_v56, %v280_v55  ;;  %v3349_v55 = vld [vmem:[#allocation4 + $0x1c0] sm:$0xf]  ;;  %v3841_v56 = vld [vmem:[#allocation4 + $0x1c4] sm:$0xf0]  ;;  %2321 = vmatpush.bf16.msrb.mxu2 %v3294_v48  ;;  %v3214_v48 = vor.u32 %v3807_v39, %v3213_v38  ;;  %v3198_v39 = vor.u32 %v3803_v37, %v3197_v36 }
 0x130   :  { %v300_v0 = vsel %vm296_vm1, %v294_v57, -inf }
 0x131   :  { %301 = vmax.xlane.f32.xlu0 %v300_v0  ;;  %v3815_v0 = vld [vmem:[#allocation4 + $0xf4] sm:$0xf0] }
 0x19c   :  { %v299_v5 = vpop.xlane.xlu0 %298 }
 0x19d   :  { %v303_v58 = vsub.f32 %v292_v52, %v299_v5  ;;  %v3181_v52 = vld [vmem:[#allocation4 + $0x70] sm:$0xf]  ;;  %v3246_v5 = vor.u32 %v3815_v0, %v3245_v54  ;;  %v3621_v0 = vld [vmem:[#allocation4 + $0x3e0] sm:$0xf] }
 0x19f   :  { %v305_v59 = vmul.f32 1.442695, %v303_v58  ;;  %v3173_v58 = vld [vmem:[#allocation4 + $0x60] sm:$0xf]  ;;  %2305 = vmatpush.bf16.msrb.mxu1 %v3246_v5  ;;  %v3909_v5 = vld [vmem:[#allocation4 + $0x3e4] sm:$0xf0] }
 0x1a1   :  { %3931 = vpow2.f32 %v305_v59  ;;  %v3286_v59 = vor.u32 %v3825_v50, %v3285_v49  ;;  %v3895_v49 = vld [vmem:[#allocation4 + $0x374] sm:$0xf0]  ;;  %v3629_v50 = vld [vmem:[#allocation4 + $0x3f0] sm:$0xf] }
 0x1a2   :  { %v3566_v54 = vor.u32 %v3895_v49, %v3565_v47  ;;  %v3125_v47 = vld [vmem:[#allocation4] sm:$0xf] }
 0x1a3   :  { %2322 = vmatpush.bf16.msrb.mxu2 %v3286_v59  ;;  %v4186_v59 = vpop.f32.mrf.mxu2  ;;  %v3189_v49 = vld [vmem:[#allocation4 + $0x80] sm:$0xf] }
 0x1a4   :  { %v302_v60 = vpop.xlane.xlu0 %301 }
 0x1a5   :  { %v304_v61 = vsub.f32 %v294_v57, %v302_v60  ;;  %v3182_v57 = vor.u32 %v3799_v53, %v3181_v52  ;;  %v3797_v60 = vld [vmem:[#allocation4 + $0x64] sm:$0xf0]  ;;  %v3254_v52 = vor.u32 %v3817_v43, %v3253_v42  ;;  %v3318_v53 = vor.u32 %v3833_v46, %v3317_v45  ;;  %v3589_v42 = vld [vmem:[#allocation4 + $0x3a0] sm:$0xf] }
 0x1a7   :  { %v3932_v62 = vpop.eup %3931  ;;  %v307_v63 = vmul.f32 1.442695, %v304_v61  ;;  %2291 = vmatpush.bf16.msrb.mxu0 %v3182_v57  ;;  %v3237_v61 = vld [vmem:[#allocation4 + $0xe0] sm:$0xf]  ;;  %v3893_v57 = vld [vmem:[#allocation4 + $0x364] sm:$0xf0] }
 0x1a8   :  { %v309_v1 = vsel %vm296_vm1, %v3932_v62, 0.0 }
 0x1a9   :  { %3933 = vpow2.f32 %v307_v63  ;;  %310 = vadd.xlane.f32.xlu1 %v309_v1  ;;  %v3350_v63 = vor.u32 %v3841_v56, %v3349_v55  ;;  %v3277_v1 = vld [vmem:[#allocation4 + $0x130] sm:$0xf]  ;;  %v3557_v56 = vld [vmem:[#allocation4 + $0x360] sm:$0xf] }
 0x1ab   :  { %2336 = vmatpush.bf16.msrb.mxu3 %v3350_v63  ;;  %v3891_v63 = vld [vmem:[#allocation4 + $0x354] sm:$0xf0] }
 0x1af   :  { %v3934_v2 = vpop.eup %3933 }
 0x1b0   :  { %v312_v3 = vsel %vm296_vm1, %v3934_v2, 0.0 }
 0x1b1   :  { %313 = vadd.xlane.f32.xlu1 %v312_v3  ;;  %v3174_v3 = vor.u32 %v3797_v60, %v3173_v58  ;;  %v4183_v58 = vpop.f32.mrf.mxu0  ;;  %v3558_v60 = vor.u32 %v3893_v57, %v3557_v56  ;;  %v3501_v56 = vld [vmem:[#allocation4 + $0x2f0] sm:$0xf]  ;;  %v3879_v57 = vld [vmem:[#allocation4 + $0x2f4] sm:$0xf0] }
 0x1b3   :  { %2292 = vmatpush.bf16.msrb.mxu0 %v3174_v3  ;;  %v4189_v3 = vpop.f32.mrf.mxu1 }
 0x21c   :  { %v311_v7 = vpop.xlane.xlu1 %310 }
 0x21d   :  { %3935 = vrcp.f32 %v311_v7  ;;  %v326_v12 = vand.u32 2147483648, %v311_v7  ;;  %v324_v14 = vand.u32 2147483647, %v311_v7  ;;  %vm320_vm3 = vweird.f32 %v311_v7 }
 0x21f   :  { %v327_v17 = vor.u32 1.1754944e-38, %v326_v12  ;;  %vm325_vm5 = vcmp.eq.f32.partialorder %v324_v14, 8.507059e+37  ;;  %v3229_v12 = vld [vmem:[#allocation4 + $0xd0] sm:$0xf] }
 0x223   :  { %v3936_v8 = vpop.eup %3935 }
 0x224   :  { %v316_v9 = vmul.f32 %v3936_v8, %v311_v7  ;;  %v314_v10 = vpop.xlane.xlu1 %313  ;;  %vm321_vm2 = vweird.f32 %v3936_v8  ;;  %v3341_v7 = vld [vmem:[#allocation4 + $0x1b0] sm:$0xf] }
 0x225   :  { %3937 = vrcp.f32 %v314_v10  ;;  %vm322_vm4 = vmor %vm320_vm3, %vm321_vm2  ;;  %v341_v23 = vand.u32 2147483648, %v314_v10  ;;  %v339_v25 = vand.u32 2147483647, %v314_v10  ;;  %vm335_vm7 = vweird.f32 %v314_v10 }
 0x226   :  { %v317_v11 = vsub.f32 1.0, %v316_v9  ;;  %v3165_v9 = vld [vmem:[#allocation4 + $0x50] sm:$0xf] }
 0x227   :  { %v342_v27 = vor.u32 1.1754944e-38, %v341_v23  ;;  %vm340_vm9 = vcmp.eq.f32.partialorder %v339_v25, 8.507059e+37  ;;  %v3793_v23 = vld [vmem:[#allocation4 + $0x44] sm:$0xf0] }
 0x228   :  { %v318_v13 = vmul.f32 %v3936_v8, %v317_v11  ;;  %v3795_v11 = vld [vmem:[#allocation4 + $0x54] sm:$0xf0] }
 0x22a   :  { %v319_v15 = vadd.f32 %v3936_v8, %v318_v13  ;;  %v3811_v13 = vld [vmem:[#allocation4 + $0xd4] sm:$0xf0] }
 0x22b   :  { %v3938_v16 = vpop.eup %3937 }
 0x22c   :  { %v331_v18 = vmul.f32 %v3938_v16, %v314_v10  ;;  %v323_v19 = vsel %vm322_vm4, %v3936_v8, %v319_v15  ;;  %vm336_vm6 = vweird.f32 %v3938_v16  ;;  %v3839_v8 = vld [vmem:[#allocation4 + $0x1b4] sm:$0xf0]  ;;  %v3269_v15 = vld [vmem:[#allocation4 + $0x120] sm:$0xf] }
 0x22d   :  { %v328_v20 = vsel %vm325_vm5, %v327_v17, %v323_v19  ;;  %vm337_vm8 = vmor %vm335_vm7, %vm336_vm6  ;;  %v3342_v14 = vor.u32 %v3839_v8, %v3341_v7  ;;  %v3333_v17 = vld [vmem:[#allocation4 + $0x1a0] sm:$0xf]  ;;  %v3230_v19 = vor.u32 %v3811_v13, %v3229_v12  ;;  %v3889_v8 = vld [vmem:[#allocation4 + $0x344] sm:$0xf0] }
 0x22e   :  { %v332_v21 = vsub.f32 1.0, %v331_v18  ;;  %v4164_v22 = vmul.f32 %v3932_v62, %v328_v20  ;;  %v3813_v62 = vld [vmem:[#allocation4 + $0xe4] sm:$0xf0]  ;;  %v3166_v18 = vor.u32 %v3795_v11, %v3165_v9  ;;  %v3541_v7 = vld [vmem:[#allocation4 + $0x340] sm:$0xf]  ;;  %v4193_v11 = vpop.f32.mrf.mxu0 }
 0x22f   :  { %v3238_v4 = vor.u32 %v3813_v62, %v3237_v61  ;;  %v3837_v20 = vld [vmem:[#allocation4 + $0x1a4] sm:$0xf0]  ;;  %2337 = vmatpush.bf16.msrb.mxu3 %v3342_v14  ;;  %v3622_v61 = vor.u32 %v3909_v5, %v3621_v0  ;;  %v3549_v62 = vld [vmem:[#allocation4 + $0x350] sm:$0xf]  ;;  %v3605_v9 = vld [vmem:[#allocation4 + $0x3c0] sm:$0xf]  ;;  %v3542_v12 = vor.u32 %v3889_v8, %v3541_v7  ;;  %v4195_v14 = vpop.f32.mrf.mxu2 }
 0x230   :  { %v333_v24 = vmul.f32 %v3938_v16, %v332_v21  ;;  %1374 = vperm.xlu0 %3923, %v4164_v22   ;;  %1400 = vperm.xlu2 %3922, %v4164_v22   ;;  %v3157_v21 = vld [vmem:[#allocation4 + $0x40] sm:$0xf]  ;;  %v3517_v0 = vld [vmem:[#allocation4 + $0x310] sm:$0xf]  ;;  %v3861_v7 = vld [vmem:[#allocation4 + $0x264] sm:$0xf0] }
 0x231   :  { %2306 = vmatpush.bf16.msrb.mxu1 %v3238_v4  ;;  %2293 = vmatpush.bf16.msrb.mxu0 %v3166_v18  ;;  %v3158_v32 = vor.u32 %v3793_v23, %v3157_v21  ;;  %v3550_v4 = vor.u32 %v3891_v63, %v3549_v62  ;;  %v3205_v18 = vld [vmem:[#allocation4 + $0xa0] sm:$0xf]  ;;  %v3805_v21 = vld [vmem:[#allocation4 + $0xa4] sm:$0xf0]  ;;  %v3533_v23 = vld [vmem:[#allocation4 + $0x330] sm:$0xf] }
 0x232   :  { %v334_v26 = vadd.f32 %v3938_v16, %v333_v24  ;;  %v3221_v24 = vld [vmem:[#allocation4 + $0xc0] sm:$0xf]  ;;  %v3581_v62 = vld [vmem:[#allocation4 + $0x390] sm:$0xf]  ;;  %v3899_v63 = vld [vmem:[#allocation4 + $0x394] sm:$0xf0] }
 0x233   :  { %v3493_v8 = vld [vmem:[#allocation4 + $0x2e0] sm:$0xf] }
 0x234   :  { %v338_v28 = vsel %vm337_vm8, %v3938_v16, %v334_v26  ;;  %v3821_v16 = vld [vmem:[#allocation4 + $0x124] sm:$0xf0]  ;;  %v3334_v26 = vor.u32 %v3837_v20, %v3333_v17 }
 0x235   :  { %v343_v29 = vsel %vm340_vm9, %v342_v27, %v338_v28  ;;  %v3270_v25 = vor.u32 %v3821_v16, %v3269_v15  ;;  %v3261_v27 = vld [vmem:[#allocation4 + $0x110] sm:$0xf]  ;;  %v3819_v28 = vld [vmem:[#allocation4 + $0x114] sm:$0xf0]  ;;  %2307 = vmatpush.bf16.msrb.mxu1 %v3230_v19  ;;  %2294 = vmatpush.bf16.msrb.mxu0 %v3158_v32  ;;  %v4197_v15 = vpop.f32.mrf.mxu1  ;;  %v3141_v16 = vld [vmem:[#allocation4 + $0x20] sm:$0xf] }
 0x236   :  { %v4168_v30 = vmul.f32 %v3934_v2, %v343_v29  ;;  %v3823_v2 = vld [vmem:[#allocation4 + $0x134] sm:$0xf0]  ;;  %v3325_v29 = vld [vmem:[#allocation4 + $0x190] sm:$0xf]  ;;  %v3262_v40 = vor.u32 %v3819_v28, %v3261_v27  ;;  %2338 = vmatpush.bf16.msrb.mxu3 %v3334_v26  ;;  %v3789_v17 = vld [vmem:[#allocation4 + $0x24] sm:$0xf0] }
 0x237   :  { %v3278_v10 = vor.u32 %v3823_v2, %v3277_v1  ;;  %v3326_v41 = vor.u32 %v3835_v34, %v3325_v29  ;;  %v3613_v1 = vld [vmem:[#allocation4 + $0x3d0] sm:$0xf]  ;;  %v3907_v2 = vld [vmem:[#allocation4 + $0x3d4] sm:$0xf0]  ;;  %v3142_v20 = vor.u32 %v3789_v17, %v3141_v16  ;;  %v4203_v32 = vpop.f32.mrf.mxu2  ;;  %v3881_v16 = vld [vmem:[#allocation4 + $0x304] sm:$0xf0] }
 0x238   :  { %1379 = vperm.xlu1 %3924, %v4168_v30   ;;  %1404 = vperm.xlu2 %3922, %v4168_v30   ;;  %v3597_v27 = vld [vmem:[#allocation4 + $0x3b0] sm:$0xf]  ;;  %v3903_v28 = vld [vmem:[#allocation4 + $0x3b4] sm:$0xf0] }
 0x239   :  { %3929 = vset.pattern.permute.xlu0 %v3999_v31  ;;  %2323 = vmatpush.bf16.msrb.mxu2 %v3278_v10  ;;  %v3905_v10 = vld [vmem:[#allocation4 + $0x3c4] sm:$0xf0]  ;;  %v3133_v29 = vld [vmem:[#allocation4 + $0x10] sm:$0xf]  ;;  %v3598_v34 = vor.u32 %v3903_v28, %v3597_v27  ;;  %v4214_v27 = vld [vmem:[%s4442_s6] sm:$0xff] }
 0x23a   :  { %2339 = vmatpush.bf16.msrb.mxu3 %v3326_v41  ;;  %2295 = vmatpush.bf16.msrb.mxu0 %v3150_v44  ;;  %v3606_v13 = vor.u32 %v3905_v10, %v3605_v9  ;;  %v3885_v41 = vld [vmem:[#allocation4 + $0x324] sm:$0xf0]  ;;  %v478_v36 = vperm.slane %v4214_v27, 3 }
 0x23b   :  { %v3901_v44 = vld [vmem:[#allocation4 + $0x3a4] sm:$0xf0] }
 0x23c   :  { %v3590_v45 = vor.u32 %v3901_v44, %v3589_v42 }
 0x23d   :  { %2324 = vmatpush.bf16.msrb.mxu2 %v3270_v25  ;;  %v3206_v25 = vor.u32 %v3805_v21, %v3205_v18  ;;  %v4205_v46 = vpop.f32.mrf.mxu1  ;;  %v3897_v21 = vld [vmem:[#allocation4 + $0x384] sm:$0xf0] }
 0x23e   :  { %2340 = vmatpush.bf16.msrb.mxu3 %v3318_v53  ;;  %2296 = vmatpush.bf16.msrb.mxu0 %v3142_v20  ;;  %v3863_v53 = vld [vmem:[#allocation4 + $0x274] sm:$0xf0]  ;;  %v3573_v20 = vld [vmem:[#allocation4 + $0x380] sm:$0xf] }
 0x23f   :  { %v1226_v9 = vpop.f32.mrf.mxu2 }
 0x240   :  { %3925 = vset.pattern.permute.xlu2 %v3999_v31 }
 0x241   :  { %1456 = vperm.xlu2 %3925, %v4164_v22   ;;  %2325 = vmatpush.bf16.msrb.mxu2 %v3262_v40  ;;  %v3525_v40 = vld [vmem:[#allocation4 + $0x320] sm:$0xf] }
 0x242   :  { %v3526_v43 = vor.u32 %v3885_v41, %v3525_v40  ;;  %v3477_v40 = vld [vmem:[#allocation4 + $0x2c0] sm:$0xf]  ;;  %v3873_v41 = vld [vmem:[#allocation4 + $0x2c4] sm:$0xf0] }
 0x245   :  { %2326 = vmatpush.bf16.msrb.mxu2 %v3254_v52  ;;  %v3437_v52 = vld [vmem:[#allocation4 + $0x270] sm:$0xf]  ;;  %v4216_v28 = vpop.f32.mrf.mxu1 }
 0x249   :  { %3926 = vset.pattern.permute.xlu2 %v4000_v6  ;;  %2375 = vmatpush.bf16.msra.mxu2 %v3566_v54 }
 0x24a   :  { %1428 = vperm.xlu2 %3926, %v4164_v22   ;;  %v3809_v22 = vld [vmem:[#allocation4 + $0xc4] sm:$0xf0] }
 0x24b   :  { %v3222_v35 = vor.u32 %v3809_v22, %v3221_v24  ;;  %v3887_v24 = vld [vmem:[#allocation4 + $0x334] sm:$0xf0]  ;;  %v4201_v22 = vpop.f32.mrf.mxu0 }
 0x24c   :  { %v3534_v26 = vor.u32 %v3887_v24, %v3533_v23  ;;  %v3574_v23 = vor.u32 %v3897_v21, %v3573_v20  ;;  %v3421_v24 = vld [vmem:[#allocation4 + $0x250] sm:$0xf]  ;;  %v479_v20 = vperm.slane %v4214_v27, 4 }
 0x24d   :  { %2308 = vmatpush.bf16.msrb.mxu1 %v3222_v35  ;;  %2376 = vmatpush.bf16.msra.mxu2 %v3558_v60  ;;  %v3787_v35 = vld [vmem:[#allocation4 + $0x14] sm:$0xf0]  ;;  %v3502_v60 = vor.u32 %v3879_v57, %v3501_v56 }
 0x24e   :  { %v3134_v38 = vor.u32 %v3787_v35, %v3133_v29  ;;  %v477_v35 = vperm.slane %v4214_v27, 2  ;;  %v3871_v57 = vld [vmem:[#allocation4 + $0x2b4] sm:$0xf0] }
 0x250   :  { %2297 = vmatpush.bf16.msrb.mxu0 %v3134_v38  ;;  %v3413_v38 = vld [vmem:[#allocation4 + $0x240] sm:$0xf] }
 0x251   :  { %2309 = vmatpush.bf16.msrb.mxu1 %v3214_v48  ;;  %2377 = vmatpush.bf16.msra.mxu2 %v3550_v4  ;;  %v3785_v48 = vld [vmem:[#allocation4 + $0x4] sm:$0xf0]  ;;  %v3582_v4 = vor.u32 %v3899_v63, %v3581_v62  ;;  %v3397_v62 = vld [vmem:[#allocation4 + $0x220] sm:$0xf] }
 0x252   :  { %3927 = vset.pattern.permute.xlu2 %v3999_v31  ;;  %v3911_v31 = vld [vmem:[#allocation4 + $0x3f4] sm:$0xf0] }
 0x253   :  { %1460 = vperm.xlu2 %3927, %v4168_v30   ;;  %v3630_v55 = vor.u32 %v3911_v31, %v3629_v50  ;;  %v3126_v50 = vor.u32 %v3785_v48, %v3125_v47  ;;  %v3801_v31 = vld [vmem:[#allocation4 + $0x84] sm:$0xf0]  ;;  %v1197_v48 = vadd.f32 %v4193_v11, %v477_v35  ;;  %v4231_v11 = vpop.f32.mrf.mxu1 }
 0x254   :  { %v3190_v54 = vor.u32 %v3801_v31, %v3189_v49  ;;  %v1225_v49 = vadd.f32 %v4203_v32, %v478_v36  ;;  %v3405_v31 = vld [vmem:[#allocation4 + $0x230] sm:$0xf]  ;;  %v1227_v32 = vadd.f32 %v1226_v9, %v478_v36 }
 0x255   :  { %2389 = vmatpush.bf16.msra.mxu3 %v3630_v55  ;;  %2378 = vmatpush.bf16.msra.mxu2 %v3542_v12  ;;  %v3438_v55 = vor.u32 %v3863_v53, %v3437_v52  ;;  %v3877_v12 = vld [vmem:[#allocation4 + $0x2e4] sm:$0xf0]  ;;  %v3855_v52 = vld [vmem:[#allocation4 + $0x234] sm:$0xf0]  ;;  %v3469_v53 = vld [vmem:[#allocation4 + $0x2b0] sm:$0xf] }
 0x256   :  { %2310 = vmatpush.bf16.msrb.mxu1 %v3206_v25  ;;  %2298 = vmatpush.bf16.msrb.mxu0 %v3126_v50  ;;  %v3494_v17 = vor.u32 %v3877_v12, %v3493_v8  ;;  %v3859_v25 = vld [vmem:[#allocation4 + $0x254] sm:$0xf0]  ;;  %v475_v50 = vperm.slane %v4214_v27, 0  ;;  %v3406_v56 = vor.u32 %v3855_v52, %v3405_v31  ;;  %v3830_v52 = vld [vmem:[#allocation4 + $0x174] sm:$0xf] }
 0x257   :  { %v3422_v29 = vor.u32 %v3859_v25, %v3421_v24  ;;  %v3851_v24 = vld [vmem:[#allocation4 + $0x214] sm:$0xf0]  ;;  %v3453_v25 = vld [vmem:[#allocation4 + $0x290] sm:$0xf] }
 0x259   :  { %2390 = vmatpush.bf16.msra.mxu3 %v3622_v61  ;;  %2379 = vmatpush.bf16.msra.mxu2 %v3534_v26  ;;  %v3883_v61 = vld [vmem:[#allocation4 + $0x314] sm:$0xf0]  ;;  %v3485_v26 = vld [vmem:[#allocation4 + $0x2d0] sm:$0xf] }
 0x25a   :  { %2311 = vmatpush.bf16.msrb.mxu1 %v3198_v39  ;;  %2347 = vmatpush.bf16.msra.mxu0 %v3438_v55  ;;  %v3857_v39 = vld [vmem:[#allocation4 + $0x244] sm:$0xf0]  ;;  %v476_v55 = vperm.slane %v4214_v27, 1 }
 0x25b   :  { %3928 = vset.pattern.permute.xlu2 %v4000_v6  ;;  %v3614_v6 = vor.u32 %v3907_v2, %v3613_v1  ;;  %v4209_v1 = vpop.f32.mrf.mxu0  ;;  %v3518_v2 = vor.u32 %v3883_v61, %v3517_v0  ;;  %v3414_v44 = vor.u32 %v3857_v39, %v3413_v38  ;;  %v1199_v0 = vadd.f32 %v4201_v22, %v477_v35  ;;  %v1322_v36 = vpop.f32.mrf.mxu1  ;;  %v3381_v38 = vld [vmem:[#allocation4 + $0x200] sm:$0xf] }
 0x25c   :  { %1432 = vperm.xlu2 %3928, %v4168_v30   ;;  %v4191_v30 = vpop.f32.mrf.mxu3  ;;  %v3470_v61 = vor.u32 %v3871_v57, %v3469_v53  ;;  %v1143_v22 = vadd.f32 %v4183_v58, %v475_v50  ;;  %v3311_v57 = vld [vmem:[#allocation4 + $0x178] sm:$0xf0] }
 0x25d   :  { %2391 = vmatpush.bf16.msra.mxu3 %v3614_v6  ;;  %2380 = vmatpush.bf16.msra.mxu2 %v3526_v43  ;;  %v3429_v6 = vld [vmem:[#allocation4 + $0x260] sm:$0xf]  ;;  %v4220_v43 = vpop.f32.mrf.mxu2 }
 0x25e   :  { %2312 = vmatpush.bf16.msrb.mxu1 %v3190_v54  ;;  %v3430_v10 = vor.u32 %v3861_v7, %v3429_v6  ;;  %v1211_v54 = vadd.f32 %v4197_v15, %v1197_v48  ;;  %v3461_v15 = vld [vmem:[#allocation4 + $0x2a0] sm:$0xf]  ;;  %v3869_v6 = vld [vmem:[#allocation4 + $0x2a4] sm:$0xf0]  ;;  %v1141_v7 = vadd.f32 %v4177_v33, %v475_v50 }
 0x25f   :  { %v3462_v9 = vor.u32 %v3869_v6, %v3461_v15 }
 0x260   :  { %2348 = vmatpush.bf16.msra.mxu0 %v3430_v10  ;;  %v1357_v12 = vmax.f32 %v1211_v54, 0.0  ;;  %v4245_v33 = vadd.f32 %v4181_v51, %v1141_v7  ;;  %v481_v51 = vperm.slane %v4214_v27, 6 }
 0x261   :  { %2392 = vmatpush.bf16.msra.mxu3 %v3606_v13  ;;  %v3509_v13 = vld [vmem:[#allocation4 + $0x300] sm:$0xf]  ;;  %2381 = vmatpush.bf16.msra.mxu2 %v3518_v2 }
 0x262   :  { %2361 = vmatpush.bf16.msra.mxu1 %v3502_v60  ;;  %v3510_v18 = vor.u32 %v3881_v16, %v3509_v13  ;;  %v1213_v13 = vadd.f32 %v4205_v46, %v1199_v0  ;;  %v4250_v46 = vadd.f32 %v4189_v3, %v1143_v22  ;;  %v3849_v3 = vld [vmem:[#allocation4 + $0x204] sm:$0xf0]  ;;  %v3846_v0 = vld [vmem:[#allocation4 + $0x1f4] sm:$0xf] }
 0x263   :  { %v4222_v47 = vpop.f32.mrf.mxu0  ;;  %v3382_v53 = vor.u32 %v3849_v3, %v3381_v38  ;;  %v3826_v38 = vld [vmem:[#allocation4 + $0x154] sm:$0xf] }
 0x264   :  { %v4199_v19 = vpop.f32.mrf.mxu3  ;;  %2349 = vmatpush.bf16.msra.mxu0 %v3422_v29  ;;  %v3867_v29 = vld [vmem:[#allocation4 + $0x294] sm:$0xf0]  ;;  %v1363_v50 = vmax.f32 %v4250_v46, 0.0  ;;  %v3842_v3 = vld [vmem:[#allocation4 + $0x1d4] sm:$0xf] }
 0x265   :  { %2393 = vmatpush.bf16.msra.mxu3 %v3598_v34  ;;  %2382 = vmatpush.bf16.msra.mxu2 %v3510_v18  ;;  %v3875_v34 = vld [vmem:[#allocation4 + $0x2d4] sm:$0xf0]  ;;  %v1169_v18 = vadd.f32 %v4186_v59, %v476_v55 }
 0x266   :  { %2362 = vmatpush.bf16.msra.mxu1 %v3494_v17  ;;  %v3486_v37 = vor.u32 %v3875_v34, %v3485_v26  ;;  %v1171_v26 = vadd.f32 %v4195_v14, %v476_v55  ;;  %v1365_v34 = vmax.f32 %v1213_v13, 0.0  ;;  %v3865_v14 = vld [vmem:[#allocation4 + $0x284] sm:$0xf0]  ;;  %v3828_v13 = vld [vmem:[#allocation4 + $0x164] sm:$0xf] }
 0x267   :  { %v4255_v39 = vadd.f32 %v4191_v30, %v1169_v18  ;;  %v3367_v18 = vld [vmem:[#allocation4 + $0x1e8] sm:$0xf0] }
 0x268   :  { %2350 = vmatpush.bf16.msra.mxu0 %v3414_v44  ;;  %v1355_v44 = vmax.f32 %v4245_v33, 0.0  ;;  %v4265_v30 = vadd.f32 %v4199_v19, %v1171_v26  ;;  %v1255_v19 = vadd.f32 %v4222_v47, %v479_v20  ;;  %v1324_v26 = vpop.f32.mrf.mxu1 }
 0x269   :  { %2394 = vmatpush.bf16.msra.mxu3 %v3590_v45  ;;  %v3478_v45 = vor.u32 %v3873_v41, %v3477_v40  ;;  %v1253_v40 = vadd.f32 %v4209_v1, %v479_v20 }
 0x26a   :  { %2363 = vmatpush.bf16.msra.mxu1 %v3486_v37  ;;  %v3454_v37 = vor.u32 %v3867_v29, %v3453_v25  ;;  %v4287_v20 = vadd.f32 %v4231_v11, %v1255_v19  ;;  %v480_v25 = vperm.slane %v4214_v27, 5  ;;  %v3824_v19 = vld [vmem:[#allocation4 + $0x144] sm:$0xf] }
 0x26b   :  { %v1308_v8 = vpop.f32.mrf.mxu0 }
 0x26c   :  { %v4207_v5 = vpop.f32.mrf.mxu3  ;;  %2351 = vmatpush.bf16.msra.mxu0 %v3406_v56 }
 0x26d   :  { %2395 = vmatpush.bf16.msra.mxu3 %v3582_v4  ;;  %v1239_v60 = vadd.f32 %v4207_v5, %v1225_v49  ;;  %v3853_v4 = vld [vmem:[#allocation4 + $0x224] sm:$0xf0]  ;;  %v4239_v5 = vpop.f32.mrf.mxu2 }
 0x26e   :  { %2364 = vmatpush.bf16.msra.mxu1 %v3478_v45  ;;  %v3398_v10 = vor.u32 %v3853_v4, %v3397_v62  ;;  %v1309_v62 = vadd.f32 %v1308_v8, %v481_v51  ;;  %v4279_v4 = vld [vmem:[%s4444_s8] sm:$0xff]  ;;  %v3303_v8 = vld [vmem:[#allocation4 + $0x168] sm:$0xf0] }
 0x26f   :  { %v1358_v16 = vmax.f32 %v1239_v60, 0.0  ;;  %v3375_v60 = vld [vmem:[#allocation4 + $0x1f8] sm:$0xf0]  ;;  %v1389_v11 = vperm.slane %v4279_v4, 0  ;;  %v1390_v29 = vperm.slane %v4279_v4, 4 }
 0x270   :  { %2352 = vmatpush.bf16.msra.mxu0 %v3398_v10  ;;  %v1364_v10 = vmax.f32 %v4265_v30, 0.0 }
 0x271   :  { %2396 = vmatpush.bf16.msra.mxu3 %v3574_v23  ;;  %v3389_v23 = vld [vmem:[#allocation4 + $0x210] sm:$0xf] }
 0x272   :  { %2365 = vmatpush.bf16.msra.mxu1 %v3470_v61  ;;  %v3390_v59 = vor.u32 %v3851_v24, %v3389_v23  ;;  %v4273_v61 = vadd.f32 %v4216_v28, %v1253_v40  ;;  %v3378_v28 = vor.u32 %v3846_v0, %v3375_v60  ;;  %v1414_v23 = vperm.slane %v4279_v4, 5  ;;  %v3295_v40 = vld [vmem:[#allocation4 + $0x158] sm:$0xf0] }
 0x273   :  { %v1310_v55 = vpop.f32.mrf.mxu0  ;;  %v3298_v0 = vor.u32 %v3826_v38, %v3295_v40  ;;  %v3343_v38 = vld [vmem:[#allocation4 + $0x1b8] sm:$0xf0]  ;;  %v3820_v40 = vld [vmem:[#allocation4 + $0x124] sm:$0xf] }
 0x274   :  { %v1240_v42 = vpop.f32.mrf.mxu3  ;;  %2353 = vmatpush.bf16.msra.mxu0 %v3390_v59  ;;  %v1359_v24 = vmax.f32 %v4273_v61, 0.0  ;;  %v3623_v61 = vld [vmem:[#allocation4 + $0x3e8] sm:$0xf0] }
 0x275   :  { %v1241_v17 = vadd.f32 %v1240_v42, %v1227_v32  ;;  %v3445_v42 = vld [vmem:[#allocation4 + $0x280] sm:$0xf]  ;;  %v4269_v31 = vpop.f32.mrf.mxu2  ;;  %v1356_v32 = vmax.f32 %v4255_v39, 0.0 }
 0x276   :  { %2366 = vmatpush.bf16.msra.mxu1 %v3462_v9  ;;  %v3446_v54 = vor.u32 %v3865_v14, %v3445_v42  ;;  %v1311_v9 = vadd.f32 %v1310_v55, %v481_v51  ;;  %v3359_v42 = vld [vmem:[#allocation4 + $0x1d8] sm:$0xf0]  ;;  %v1367_v14 = vmax.f32 %v4287_v20, 0.0  ;;  %v1442_v55 = vperm.slane %v4279_v4, 6  ;;  %v3223_v20 = vld [vmem:[#allocation4 + $0xc8] sm:$0xf0] }
 0x277   :  { %v1366_v35 = vmax.f32 %v1241_v17, 0.0  ;;  %v3844_v17 = vld [vmem:[#allocation4 + $0x1e4] sm:$0xf]  ;;  %v3362_v60 = vor.u32 %v3842_v3, %v3359_v42  ;;  %v3271_v3 = vld [vmem:[#allocation4 + $0x128] sm:$0xf0] }
 0x278   :  { %2354 = vmatpush.bf16.msra.mxu0 %v3382_v53  ;;  %v4306_v53 = vperm.slane %v1389_v11, 0  ;;  %v3279_v11 = vld [vmem:[#allocation4 + $0x138] sm:$0xf0]  ;;  %v3274_v39 = vor.u32 %v3820_v40, %v3271_v3 }
 0x27a   :  { %2367 = vmatpush.bf16.msra.mxu1 %v3454_v37  ;;  %v3370_v37 = vor.u32 %v3844_v17, %v3367_v18  ;;  %v4322_v18 = vperm.slane %v1442_v55, 2 }
 0x27c   :  { %v4233_v63 = vpop.f32.mrf.mxu3 }
 0x27e   :  { %2368 = vmatpush.bf16.msra.mxu1 %v3446_v54  ;;  %v4308_v54 = vperm.slane %v1390_v29, 0  ;;  %v3838_v29 = vld [vmem:[#allocation4 + $0x1b4] sm:$0xf] }
 0x27f   :  { %v3346_v33 = vor.u32 %v3838_v29, %v3343_v38  ;;  %v3327_v38 = vld [vmem:[#allocation4 + $0x198] sm:$0xf0] }
 0x284   :  { %v4267_v1 = vpop.f32.mrf.mxu3 }
 0x28a   :  { %v4235_v2 = vpop.permute.xlu2 %1400 }
 0x28b   :  { %v1407_v21 = vmul.f32 %v4235_v2, %v1357_v12  ;;  %v1408_v58 = vmul.f32 %v4235_v2, %v1358_v16  ;;  %v3314_v12 = vor.u32 %v3830_v52, %v3311_v57  ;;  %v1418_v52 = vperm.slane %v1414_v23, 1 }
 0x28c   :  { %v1350_v51 = vpop.f32.mrf.mxu3 }
 0x28d   :  { %v1411_v45 = vpack.c.bf16 %v1408_v58, %v1407_v21  ;;  %v4289_v21 = vadd.f32 %v1322_v36, %v1309_v62  ;;  %v1413_v58 = vperm.slane %v4279_v4, 1  ;;  %v3306_v36 = vor.u32 %v3828_v13, %v3303_v8 }
 0x28e   :  { %v1470_v13 = vperm.slane %v4279_v4, 7 }
 0x28f   :  { %v1495_v15 = vunpack.c.l.b16 %v1411_v45  ;;  %v1496_v7 = vunpack.c.h.b16 %v1411_v45  ;;  %v1361_v45 = vmax.f32 %v4289_v21, 0.0 }
 0x290   :  { %v4334_v55 = vperm.slane %v1470_v13, 3 }
 0x292   :  { %v4258_v41 = vpop.permute.xlu2 %1404 }
 0x293   :  { %v1409_v48 = vmul.f32 %v4258_v41, %v1365_v34  ;;  %v1410_v49 = vmul.f32 %v4258_v41, %v1366_v35  ;;  %v4301_v34 = vadd.f32 %v1324_v26, %v1311_v9  ;;  %v482_v35 = vperm.slane %v4214_v27, 7  ;;  %v3822_v26 = vld [vmem:[#allocation4 + $0x134] sm:$0xf] }
 0x294   :  { %v1441_v27 = vperm.slane %v4279_v4, 2  ;;  %v1420_v9 = vmul.f32 %v1418_v52, %v4235_v2  ;;  %v1352_v42 = vpop.f32.mrf.mxu3 }
 0x295   :  { %v1412_v56 = vpack.c.bf16 %v1410_v49, %v1409_v48  ;;  %v1338_v48 = vpop.f32.mrf.mxu2  ;;  %v1417_v49 = vperm.slane %v1413_v58, 1  ;;  %v1337_v57 = vadd.f32 %v4269_v31, %v482_v35 }
 0x296   :  { %v1339_v62 = vadd.f32 %v1338_v48, %v482_v35  ;;  %v4320_v17 = vperm.slane %v1441_v27, 2  ;;  %v1283_v35 = vadd.f32 %v4239_v5, %v480_v25 }
 0x297   :  { %v1497_v6 = vunpack.c.l.b16 %v1412_v56  ;;  %v1498_v22 = vunpack.c.h.b16 %v1412_v56  ;;  %v1369_v56 = vmax.f32 %v4301_v34, 0.0  ;;  %v1351_v21 = vadd.f32 %v1350_v51, %v1337_v57  ;;  %v3239_v34 = vld [vmem:[#allocation4 + $0xe8] sm:$0xf0] }
 0x298   :  { %v1353_v57 = vadd.f32 %v1352_v42, %v1339_v62  ;;  %v3335_v62 = vld [vmem:[#allocation4 + $0x1a8] sm:$0xf0] }
 0x299   :  { %v4282_v16 = vpack.c.b16 %v1497_v6, %v1495_v15  ;;  %v4284_v47 = vpack.c.b16 %v1498_v22, %v1496_v7  ;;  %v3287_v15 = vld [vmem:[#allocation4 + $0x148] sm:$0xf0]  ;;  %v3840_v6 = vld [vmem:[#allocation4 + $0x1c4] sm:$0xf]  ;;  %v1419_v22 = vmul.f32 %v1417_v49, %v4235_v2 }
 0x29a   :  { %v3351_v7 = vld [vmem:[#allocation4 + $0x1c8] sm:$0xf0]  ;;  %v3290_v23 = vor.u32 %v3824_v19, %v3287_v15  ;;  %v3836_v19 = vld [vmem:[#allocation4 + $0x1a4] sm:$0xf]  ;;  %v1370_v13 = vmax.f32 %v1353_v57, 0.0 }
 0x29b   :  { %2327 = vmatmul.bf16.vlgmr.msrb.gmra.mxu2 %v4282_v16  ;;  %2341 = vmatmul.bf16.vlgmr.msrb.gmra.mxu3 %v4284_v47  ;;  %v4297_v59 = vpop.permute.xlu2 %1456  ;;  %v3354_v2 = vor.u32 %v3840_v6, %v3351_v7 }
 0x29c   :  { %2431 = vmatpush.bf16.msrb.mxu2 %v3314_v12  ;;  %2445 = vmatpush.bf16.msrb.mxu3 %v3378_v28  ;;  %v1469_v28 = vperm.slane %v4279_v4, 3  ;;  %v1281_v4 = vadd.f32 %v4220_v43, %v480_v25  ;;  %v3282_v43 = vor.u32 %v3822_v26, %v3279_v11  ;;  %v3818_v26 = vld [vmem:[#allocation4 + $0x114] sm:$0xf]  ;;  %v4368_v11 = vadd.f32 %v4267_v1, %v1283_v35 }
 0x29e   :  { %v4332_v27 = vperm.slane %v1469_v28, 3  ;;  %v4359_v46 = vadd.f32 %v4233_v63, %v1281_v4  ;;  %v3263_v4 = vld [vmem:[#allocation4 + $0x118] sm:$0xf0] }
 0x2a0   :  { %2432 = vmatpush.bf16.msrb.mxu2 %v3306_v36  ;;  %2446 = vmatpush.bf16.msrb.mxu3 %v3370_v37 }
 0x2a2   :  { %v1375_v12 = vpop.permute.xlu0 %1374 }
 0x2a3   :  { %v1395_v31 = vmul.f32 %v4306_v53, %v1375_v12  ;;  %v1396_v8 = vmul.f32 %v4308_v54, %v1375_v12  ;;  %v1382_v51 = vmul.f32 %v1375_v12, %v1355_v44  ;;  %v1383_v48 = vmul.f32 %v1375_v12, %v1356_v32 }
 0x2a4   :  { %2433 = vmatpush.bf16.msrb.mxu2 %v3298_v0  ;;  %2447 = vmatpush.bf16.msrb.mxu3 %v3362_v60  ;;  %v4324_v58 = vpop.permute.xlu2 %1428  ;;  %v1362_v0 = vmax.f32 %v1351_v21, 0.0  ;;  %v1421_v60 = vmul.f32 %v1417_v49, %v4258_v41  ;;  %v1422_v44 = vmul.f32 %v1418_v52, %v4258_v41  ;;  %v1463_v32 = vmul.f32 %v4297_v59, %v1361_v45  ;;  %v3183_v21 = vld [vmem:[#allocation4 + $0x78] sm:$0xf0] }
 0x2a5   :  { %v1423_v36 = vadd.f32 %v1419_v22, %v1395_v31  ;;  %v1424_v37 = vadd.f32 %v1420_v9, %v1396_v8  ;;  %v1447_v5 = vmul.f32 %v4320_v17, %v4324_v58  ;;  %v1448_v25 = vmul.f32 %v4322_v18, %v4324_v58  ;;  %v3798_v8 = vld [vmem:[#allocation4 + $0x74] sm:$0xf] }
 0x2a6   :  { %v1464_v7 = vmul.f32 %v4297_v59, %v1362_v0  ;;  %v1386_v22 = vpack.c.bf16 %v1383_v48, %v1382_v51  ;;  %v1475_v12 = vmul.f32 %v4332_v27, %v4297_v59  ;;  %v1476_v49 = vmul.f32 %v4334_v55, %v4297_v59  ;;  %v3796_v48 = vld [vmem:[#allocation4 + $0x64] sm:$0xf] }
 0x2a7   :  { %v1451_v15 = vadd.f32 %v1447_v5, %v1423_v36  ;;  %v1452_v6 = vadd.f32 %v1448_v25, %v1424_v37  ;;  %v3338_v31 = vor.u32 %v3836_v19, %v3335_v62  ;;  %v3834_v37 = vld [vmem:[#allocation4 + $0x194] sm:$0xf]  ;;  %v3186_v1 = vor.u32 %v3798_v8, %v3183_v21  ;;  %v3812_v5 = vld [vmem:[#allocation4 + $0xe4] sm:$0xf]  ;;  %v3167_v8 = vld [vmem:[#allocation4 + $0x58] sm:$0xf0] }
 0x2a8   :  { %2434 = vmatpush.bf16.msrb.mxu2 %v3290_v23  ;;  %2448 = vmatpush.bf16.msrb.mxu3 %v3354_v2  ;;  %v1467_v29 = vpack.c.bf16 %v1464_v7, %v1463_v32  ;;  %v1485_v40 = vunpack.c.l.b16 %v1386_v22  ;;  %v1486_v3 = vunpack.c.h.b16 %v1386_v22  ;;  %v3266_v0 = vor.u32 %v3818_v26, %v3263_v4  ;;  %v3832_v32 = vld [vmem:[#allocation4 + $0x184] sm:$0xf]  ;;  %v3894_v7 = vld [vmem:[#allocation4 + $0x374] sm:$0xf]  ;;  %v3567_v22 = vld [vmem:[#allocation4 + $0x378] sm:$0xf0] }
 0x2a9   :  { %v4354_v23 = vadd.f32 %v1475_v12, %v1451_v15  ;;  %v4356_v2 = vadd.f32 %v1476_v49, %v1452_v6  ;;  %v1368_v12 = vmax.f32 %v4368_v11, 0.0  ;;  %v3810_v21 = vld [vmem:[#allocation4 + $0xd4] sm:$0xf]  ;;  %v3892_v26 = vld [vmem:[#allocation4 + $0x364] sm:$0xf] }
 0x2aa   :  { %v1380_v9 = vpop.permute.xlu1 %1379  ;;  %v1515_v19 = vunpack.c.l.b16 %v1467_v29  ;;  %v1516_v15 = vunpack.c.h.b16 %v1467_v29  ;;  %v3559_v11 = vld [vmem:[#allocation4 + $0x368] sm:$0xf0]  ;;  %v1435_v29 = vmul.f32 %v4324_v58, %v1359_v24 }
 0x2ab   :  { %v1384_v28 = vmul.f32 %v1380_v9, %v1363_v50  ;;  %v1385_v41 = vmul.f32 %v1380_v9, %v1364_v10  ;;  %v1397_v45 = vmul.f32 %v4306_v53, %v1380_v9  ;;  %v1398_v52 = vmul.f32 %v4308_v54, %v1380_v9  ;;  %v3814_v53 = vld [vmem:[#allocation4 + $0xf4] sm:$0xf]  ;;  %v3247_v54 = vld [vmem:[#allocation4 + $0xf8] sm:$0xf0] }
 0x2ac   :  { %2435 = vmatpush.bf16.msrb.mxu2 %v3282_v43  ;;  %2449 = vmatpush.bf16.msrb.mxu3 %v3346_v33  ;;  %v3250_v35 = vor.u32 %v3814_v53, %v3247_v54  ;;  %v3175_v43 = vld [vmem:[#allocation4 + $0x68] sm:$0xf0]  ;;  %v3816_v33 = vld [vmem:[#allocation4 + $0x104] sm:$0xf]  ;;  %v1360_v9 = vmax.f32 %v4359_v46, 0.0  ;;  %v3570_v53 = vor.u32 %v3894_v7, %v3567_v22 }
 0x2ad   :  { %v1387_v50 = vpack.c.bf16 %v1385_v41, %v1384_v28  ;;  %v4361_v30 = vadd.f32 %v1421_v60, %v1397_v45  ;;  %v4363_v10 = vadd.f32 %v1422_v44, %v1398_v52  ;;  %v4365_v59 = vpop.permute.xlu2 %1460  ;;  %v3330_v60 = vor.u32 %v3834_v37, %v3327_v38  ;;  %v3255_v44 = vld [vmem:[#allocation4 + $0x108] sm:$0xf0]  ;;  %v3910_v28 = vld [vmem:[#allocation4 + $0x3f4] sm:$0xf]  ;;  %v3631_v41 = vld [vmem:[#allocation4 + $0x3f8] sm:$0xf0] }
 0x2ae   :  { %v1465_v36 = vmul.f32 %v4365_v59, %v1369_v56  ;;  %v1466_v63 = vmul.f32 %v4365_v59, %v1370_v13  ;;  %v3178_v49 = vor.u32 %v3796_v48, %v3175_v43  ;;  %v3242_v13 = vor.u32 %v3812_v5, %v3239_v34  ;;  %v3231_v54 = vld [vmem:[#allocation4 + $0xd8] sm:$0xf0]  ;;  %v3792_v48 = vld [vmem:[#allocation4 + $0x44] sm:$0xf]  ;;  %v3890_v43 = vld [vmem:[#allocation4 + $0x354] sm:$0xf] }
 0x2af   :  { %v1487_v42 = vunpack.c.l.b16 %v1387_v50  ;;  %v1488_v51 = vunpack.c.h.b16 %v1387_v50  ;;  %v3258_v46 = vor.u32 %v3816_v33, %v3255_v44  ;;  %v3634_v4 = vor.u32 %v3910_v28, %v3631_v41  ;;  %v3551_v33 = vld [vmem:[#allocation4 + $0x358] sm:$0xf0]  ;;  %v3906_v44 = vld [vmem:[#allocation4 + $0x3d4] sm:$0xf]  ;;  %v3888_v22 = vld [vmem:[#allocation4 + $0x344] sm:$0xf] }
 0x2b0   :  { %v1468_v57 = vpack.c.bf16 %v1466_v63, %v1465_v36  ;;  %2436 = vmatpush.bf16.msrb.mxu2 %v3274_v39  ;;  %2450 = vmatpush.bf16.msrb.mxu3 %v3338_v31  ;;  %v3319_v39 = vld [vmem:[#allocation4 + $0x188] sm:$0xf0]  ;;  %v3794_v31 = vld [vmem:[#allocation4 + $0x54] sm:$0xf]  ;;  %v1436_v36 = vmul.f32 %v4324_v58, %v1360_v9  ;;  %v3234_v58 = vor.u32 %v3810_v21, %v3231_v54  ;;  %v3215_v7 = vld [vmem:[#allocation4 + $0xb8] sm:$0xf0] }
 0x2b1   :  { %v4374_v25 = vpack.c.b16 %v1487_v42, %v1485_v40  ;;  %v4376_v56 = vpack.c.b16 %v1488_v51, %v1486_v3  ;;  %v3322_v50 = vor.u32 %v3832_v32, %v3319_v39  ;;  %v3908_v42 = vld [vmem:[#allocation4 + $0x3e4] sm:$0xf]  ;;  %v3170_v24 = vor.u32 %v3794_v31, %v3167_v8  ;;  %v3615_v32 = vld [vmem:[#allocation4 + $0x3d8] sm:$0xf0]  ;;  %v3607_v41 = vld [vmem:[#allocation4 + $0x3c8] sm:$0xf0] }
 0x2b2   :  { %v1517_v62 = vunpack.c.l.b16 %v1468_v57  ;;  %v1518_v6 = vunpack.c.h.b16 %v1468_v57  ;;  %v3562_v51 = vor.u32 %v3892_v26, %v3559_v11  ;;  %v3159_v57 = vld [vmem:[#allocation4 + $0x48] sm:$0xf0]  ;;  %v1477_v5 = vmul.f32 %v4332_v27, %v4365_v59  ;;  %v3151_v39 = vld [vmem:[#allocation4 + $0x38] sm:$0xf0]  ;;  %v3806_v27 = vld [vmem:[#allocation4 + $0xb4] sm:$0xf] }
 0x2b3   :  { %2299 = vmatmul.bf16.vlgmr.msrb.gmra.mxu0 %v4374_v25  ;;  %2313 = vmatmul.bf16.vlgmr.msrb.gmra.mxu1 %v4376_v56  ;;  %v1478_v34 = vmul.f32 %v4334_v55, %v4365_v59  ;;  %v3554_v55 = vor.u32 %v3890_v43, %v3551_v33  ;;  %v3618_v59 = vor.u32 %v3906_v44, %v3615_v32  ;;  %v3904_v28 = vld [vmem:[#allocation4 + $0x3c4] sm:$0xf]  ;;  %v3207_v54 = vld [vmem:[#allocation4 + $0xa8] sm:$0xf0]  ;;  %v3503_v33 = vld [vmem:[#allocation4 + $0x2f8] sm:$0xf0] }
 0x2b4   :  { %2403 = vmatpush.bf16.msrb.mxu0 %v3186_v1  ;;  %2417 = vmatpush.bf16.msrb.mxu1 %v3250_v35  ;;  %v4382_v45 = vpack.c.b16 %v1517_v62, %v1515_v19  ;;  %v4384_v52 = vpack.c.b16 %v1518_v6, %v1516_v15  ;;  %v3808_v35 = vld [vmem:[#allocation4 + $0xc4] sm:$0xf]  ;;  %v3790_v19 = vld [vmem:[#allocation4 + $0x34] sm:$0xf]  ;;  %v3218_v31 = vor.u32 %v3806_v27, %v3215_v7  ;;  %v3191_v43 = vld [vmem:[#allocation4 + $0x88] sm:$0xf0] }
 0x2b5   :  { %2437 = vmatpush.bf16.msrb.mxu2 %v3266_v0  ;;  %2451 = vmatpush.bf16.msrb.mxu3 %v3330_v60  ;;  %v1439_v0 = vpack.c.bf16 %v1436_v36, %v1435_v29  ;;  %v3162_v60 = vor.u32 %v3792_v48, %v3159_v57  ;;  %v3788_v8 = vld [vmem:[#allocation4 + $0x24] sm:$0xf]  ;;  %v3610_v11 = vor.u32 %v3904_v28, %v3607_v41  ;;  %v3886_v29 = vld [vmem:[#allocation4 + $0x334] sm:$0xf]  ;;  %v3535_v36 = vld [vmem:[#allocation4 + $0x338] sm:$0xf0] }
 0x2b6   :  { %2383 = vmatmul.bf16.vlgmr.msra.gmra.mxu2 %v4382_v45  ;;  %2397 = vmatmul.bf16.vlgmr.msra.gmra.mxu3 %v4384_v52  ;;  %v1433_v63 = vpop.permute.xlu2 %1432  ;;  %v3527_v48 = vld [vmem:[#allocation4 + $0x328] sm:$0xf0]  ;;  %v3900_v57 = vld [vmem:[#allocation4 + $0x3a4] sm:$0xf]  ;;  %v3519_v44 = vld [vmem:[#allocation4 + $0x318] sm:$0xf0] }
 0x2b7   :  { %v1437_v37 = vmul.f32 %v1433_v63, %v1367_v14  ;;  %v1438_v38 = vmul.f32 %v1433_v63, %v1368_v12  ;;  %v1449_v40 = vmul.f32 %v4320_v17, %v1433_v63  ;;  %v1450_v3 = vmul.f32 %v4322_v18, %v1433_v63  ;;  %v3902_v63 = vld [vmem:[#allocation4 + $0x3b4] sm:$0xf]  ;;  %v3860_v27 = vld [vmem:[#allocation4 + $0x264] sm:$0xf]  ;;  %v3431_v7 = vld [vmem:[#allocation4 + $0x268] sm:$0xf0] }
 0x2b8   :  { %2404 = vmatpush.bf16.msrb.mxu0 %v3178_v49  ;;  %2418 = vmatpush.bf16.msrb.mxu1 %v3242_v13  ;;  %v3626_v18 = vor.u32 %v3908_v42, %v3623_v61  ;;  %v1505_v9 = vunpack.c.l.b16 %v1439_v0  ;;  %v1506_v12 = vunpack.c.h.b16 %v1439_v0  ;;  %v3543_v49 = vld [vmem:[#allocation4 + $0x348] sm:$0xf0]  ;;  %v3154_v13 = vor.u32 %v3790_v19, %v3151_v39  ;;  %v3802_v42 = vld [vmem:[#allocation4 + $0x94] sm:$0xf]  ;;  %v3199_v61 = vld [vmem:[#allocation4 + $0x98] sm:$0xf0] }
 0x2b9   :  { %v1440_v1 = vpack.c.bf16 %v1438_v38, %v1437_v37  ;;  %2438 = vmatpush.bf16.msrb.mxu2 %v3258_v46  ;;  %2452 = vmatpush.bf16.msrb.mxu3 %v3322_v50  ;;  %v1453_v14 = vadd.f32 %v1449_v40, %v4361_v30  ;;  %v1454_v17 = vadd.f32 %v1450_v3, %v4363_v10  ;;  %v3143_v50 = vld [vmem:[#allocation4 + $0x28] sm:$0xf0]  ;;  %v3786_v40 = vld [vmem:[#allocation4 + $0x14] sm:$0xf]  ;;  %v3135_v3 = vld [vmem:[#allocation4 + $0x18] sm:$0xf0] }
 0x2ba   :  { %v3226_v30 = vor.u32 %v3808_v35, %v3223_v20  ;;  %v3546_v26 = vor.u32 %v3888_v22, %v3543_v49  ;;  %v3146_v37 = vor.u32 %v3788_v8, %v3143_v50  ;;  %v3138_v35 = vor.u32 %v3786_v40, %v3135_v3  ;;  %v3898_v32 = vld [vmem:[#allocation4 + $0x394] sm:$0xf]  ;;  %v3876_v22 = vld [vmem:[#allocation4 + $0x2e4] sm:$0xf]  ;;  %v3511_v49 = vld [vmem:[#allocation4 + $0x308] sm:$0xf0] }
 0x2bb   :  { %v4402_v10 = vadd.f32 %v1477_v5, %v1453_v14  ;;  %v4404_v62 = vadd.f32 %v1478_v34, %v1454_v17  ;;  %v1507_v15 = vunpack.c.l.b16 %v1440_v1  ;;  %v1508_v6 = vunpack.c.h.b16 %v1440_v1  ;;  %v3591_v1 = vld [vmem:[#allocation4 + $0x3a8] sm:$0xf0]  ;;  %v3784_v14 = vld [vmem:[#allocation4 + $0x4] sm:$0xf]  ;;  %v3862_v5 = vld [vmem:[#allocation4 + $0x274] sm:$0xf] }
 0x2bc   :  { %2405 = vmatpush.bf16.msrb.mxu0 %v3170_v24  ;;  %2419 = vmatpush.bf16.msrb.mxu1 %v3234_v58  ;;  %v3538_v24 = vor.u32 %v3886_v29, %v3535_v36  ;;  %v3202_v20 = vor.u32 %v3802_v42, %v3199_v61  ;;  %v3127_v17 = vld [vmem:[#allocation4 + $0x8] sm:$0xf0]  ;;  %v3439_v34 = vld [vmem:[#allocation4 + $0x278] sm:$0xf0]  ;;  %v3896_v28 = vld [vmem:[#allocation4 + $0x384] sm:$0xf] }
 0x2bd   :  { %2487 = vmatpush.bf16.msra.mxu2 %v3570_v53  ;;  %2501 = vmatpush.bf16.msra.mxu3 %v3634_v4  ;;  %v4406_v21 = vpack.c.b16 %v1507_v15, %v1505_v9  ;;  %v4408_v46 = vpack.c.b16 %v1508_v6, %v1506_v12  ;;  %v3804_v53 = vld [vmem:[#allocation4 + $0xa4] sm:$0xf]  ;;  %v3599_v4 = vld [vmem:[#allocation4 + $0x3b8] sm:$0xf0]  ;;  %v3130_v19 = vor.u32 %v3784_v14, %v3127_v17  ;;  %v3495_v9 = vld [vmem:[#allocation4 + $0x2e8] sm:$0xf0] }
 0x2be   :  { %v3210_v38 = vor.u32 %v3804_v53, %v3207_v54  ;;  %v3602_v58 = vor.u32 %v3902_v63, %v3599_v4  ;;  %v3442_v6 = vor.u32 %v3862_v5, %v3439_v34  ;;  %v3880_v12 = vld [vmem:[#allocation4 + $0x304] sm:$0xf]  ;;  %v3575_v41 = vld [vmem:[#allocation4 + $0x388] sm:$0xf0]  ;;  %v3858_v53 = vld [vmem:[#allocation4 + $0x254] sm:$0xf] }
 0x2bf   :  { %v3514_v8 = vor.u32 %v3880_v12, %v3511_v49  ;;  %v3578_v50 = vor.u32 %v3896_v28, %v3575_v41  ;;  %v3423_v54 = vld [vmem:[#allocation4 + $0x258] sm:$0xf0]  ;;  %v3856_v63 = vld [vmem:[#allocation4 + $0x244] sm:$0xf]  ;;  %v3415_v4 = vld [vmem:[#allocation4 + $0x248] sm:$0xf0] }
 0x2c0   :  { %2406 = vmatpush.bf16.msrb.mxu0 %v3162_v60  ;;  %2420 = vmatpush.bf16.msrb.mxu1 %v3226_v30  ;;  %v3594_v60 = vor.u32 %v3900_v57, %v3591_v1  ;;  %v3583_v30 = vld [vmem:[#allocation4 + $0x398] sm:$0xf0]  ;;  %v3426_v29 = vor.u32 %v3858_v53, %v3423_v54  ;;  %v3854_v40 = vld [vmem:[#allocation4 + $0x234] sm:$0xf]  ;;  %v3868_v57 = vld [vmem:[#allocation4 + $0x2a4] sm:$0xf] }
 0x2c1   :  { %2488 = vmatpush.bf16.msra.mxu2 %v3562_v51  ;;  %2502 = vmatpush.bf16.msra.mxu3 %v3626_v18  ;;  %v3884_v51 = vld [vmem:[#allocation4 + $0x324] sm:$0xf]  ;;  %v3407_v3 = vld [vmem:[#allocation4 + $0x238] sm:$0xf0]  ;;  %v3870_v42 = vld [vmem:[#allocation4 + $0x2b4] sm:$0xf] }
 0x2c2   :  { %v3800_v18 = vld [vmem:[#allocation4 + $0x84] sm:$0xf]  ;;  %v3530_v0 = vor.u32 %v3884_v51, %v3527_v48  ;;  %v3471_v61 = vld [vmem:[#allocation4 + $0x2b8] sm:$0xf0]  ;;  %v3399_v48 = vld [vmem:[#allocation4 + $0x228] sm:$0xf0] }
 0x2c3   :  { %2355 = vmatmul.bf16.vlgmr.msra.gmra.mxu0 %v4406_v21  ;;  %2369 = vmatmul.bf16.vlgmr.msra.gmra.mxu1 %v4408_v46  ;;  %v3194_v15 = vor.u32 %v3800_v18, %v3191_v43  ;;  %v3852_v51 = vld [vmem:[#allocation4 + $0x224] sm:$0xf]  ;;  %v3463_v1 = vld [vmem:[#allocation4 + $0x2a8] sm:$0xf0]  ;;  %v3866_v14 = vld [vmem:[#allocation4 + $0x294] sm:$0xf] }
 0x2c4   :  { %2407 = vmatpush.bf16.msrb.mxu0 %v3154_v13  ;;  %2421 = vmatpush.bf16.msrb.mxu1 %v3218_v31  ;;  %v3434_v13 = vor.u32 %v3860_v27, %v3431_v7  ;;  %v3498_v31 = vor.u32 %v3876_v22, %v3495_v9  ;;  %v3455_v17 = vld [vmem:[#allocation4 + $0x298] sm:$0xf0]  ;;  %v3848_v5 = vld [vmem:[#allocation4 + $0x204] sm:$0xf]  ;;  %v3383_v34 = vld [vmem:[#allocation4 + $0x208] sm:$0xf0] }
 0x2c5   :  { %2489 = vmatpush.bf16.msra.mxu2 %v3554_v55  ;;  %2503 = vmatpush.bf16.msra.mxu3 %v3618_v59  ;;  %v3586_v59 = vor.u32 %v3898_v32, %v3583_v30  ;;  %v3458_v43 = vor.u32 %v3866_v14, %v3455_v17 }
 0x2c6   :  { %2439 = vmatmul.bf16.vlgmr.msrb.gmra.mxu2 %v4282_v16  ;;  %2453 = vmatmul.bf16.vlgmr.msrb.gmra.mxu3 %v4284_v47  ;;  %v3878_v16 = vld [vmem:[#allocation4 + $0x2f4] sm:$0xf] }
 0x2c7   :  { %v3882_v47 = vld [vmem:[#allocation4 + $0x314] sm:$0xf]  ;;  %v3506_v39 = vor.u32 %v3878_v16, %v3503_v33  ;;  %v3386_v16 = vor.u32 %v3848_v5, %v3383_v34 }
 0x2c8   :  { %2408 = vmatpush.bf16.msrb.mxu0 %v3146_v37  ;;  %2422 = vmatpush.bf16.msrb.mxu1 %v3210_v38  ;;  %v3522_v55 = vor.u32 %v3882_v47, %v3519_v44  ;;  %v3872_v37 = vld [vmem:[#allocation4 + $0x2c4] sm:$0xf]  ;;  %v3479_v38 = vld [vmem:[#allocation4 + $0x2c8] sm:$0xf0] }
 0x2c9   :  { %2490 = vmatpush.bf16.msra.mxu2 %v3546_v26  ;;  %2504 = vmatpush.bf16.msra.mxu3 %v3610_v11  ;;  %v3874_v26 = vld [vmem:[#allocation4 + $0x2d4] sm:$0xf]  ;;  %v3487_v11 = vld [vmem:[#allocation4 + $0x2d8] sm:$0xf0] }
 0x2ca   :  { %v3490_v36 = vor.u32 %v3874_v26, %v3487_v11 }
 0x2cc   :  { %2409 = vmatpush.bf16.msrb.mxu0 %v3138_v35  ;;  %2423 = vmatpush.bf16.msrb.mxu1 %v3202_v20  ;;  %v3850_v35 = vld [vmem:[#allocation4 + $0x214] sm:$0xf]  ;;  %v3391_v20 = vld [vmem:[#allocation4 + $0x218] sm:$0xf0] }
 0x2cd   :  { %2491 = vmatpush.bf16.msra.mxu2 %v3538_v24  ;;  %2505 = vmatpush.bf16.msra.mxu3 %v3602_v58  ;;  %v3410_v24 = vor.u32 %v3854_v40, %v3407_v3  ;;  %v3474_v58 = vor.u32 %v3870_v42, %v3471_v61  ;;  %v3394_v18 = vor.u32 %v3850_v35, %v3391_v20 }
 0x2d0   :  { %2410 = vmatpush.bf16.msrb.mxu0 %v3130_v19  ;;  %2424 = vmatpush.bf16.msrb.mxu1 %v3194_v15 }
 0x2d1   :  { %2492 = vmatpush.bf16.msra.mxu2 %v3530_v0  ;;  %2506 = vmatpush.bf16.msra.mxu3 %v3594_v60  ;;  %v3864_v0 = vld [vmem:[#allocation4 + $0x284] sm:$0xf]  ;;  %v3447_v60 = vld [vmem:[#allocation4 + $0x288] sm:$0xf0] }
 0x2d2   :  { %v3450_v33 = vor.u32 %v3864_v0, %v3447_v60 }
 0x2d3   :  { %2411 = vmatmul.bf16.vlgmr.msrb.gmra.mxu0 %v4374_v25  ;;  %2425 = vmatmul.bf16.vlgmr.msrb.gmra.mxu1 %v4376_v56  ;;  %v3418_v25 = vor.u32 %v3856_v63, %v3415_v4  ;;  %v3482_v56 = vor.u32 %v3872_v37, %v3479_v38 }
 0x2d4   :  { %2459 = vmatpush.bf16.msra.mxu0 %v3442_v6  ;;  %2473 = vmatpush.bf16.msra.mxu1 %v3506_v39 }
 0x2d5   :  { %2493 = vmatpush.bf16.msra.mxu2 %v3522_v55  ;;  %2507 = vmatpush.bf16.msra.mxu3 %v3586_v59 }
 0x2d8   :  { %2460 = vmatpush.bf16.msra.mxu0 %v3434_v13  ;;  %2474 = vmatpush.bf16.msra.mxu1 %v3498_v31 }
 0x2d9   :  { %2494 = vmatpush.bf16.msra.mxu2 %v3514_v8  ;;  %2508 = vmatpush.bf16.msra.mxu3 %v3578_v50 }
 0x2dc   :  { %2495 = vmatmul.bf16.vlgmr.msra.gmra.mxu2 %v4382_v45  ;;  %2509 = vmatmul.bf16.vlgmr.msra.gmra.mxu3 %v4384_v52  ;;  %v3402_v45 = vor.u32 %v3852_v51, %v3399_v48  ;;  %v3466_v52 = vor.u32 %v3868_v57, %v3463_v1 }
 0x2dd   :  { %2461 = vmatpush.bf16.msra.mxu0 %v3426_v29  ;;  %2475 = vmatpush.bf16.msra.mxu1 %v3490_v36 }
 0x2e1   :  { %2462 = vmatpush.bf16.msra.mxu0 %v3418_v25  ;;  %2476 = vmatpush.bf16.msra.mxu1 %v3482_v56 }
 0x2e5   :  { %2463 = vmatpush.bf16.msra.mxu0 %v3410_v24  ;;  %2477 = vmatpush.bf16.msra.mxu1 %v3474_v58 }
 0x2e9   :  { %2464 = vmatpush.bf16.msra.mxu0 %v3402_v45  ;;  %2478 = vmatpush.bf16.msra.mxu1 %v3466_v52 }
 0x2ed   :  { %2465 = vmatpush.bf16.msra.mxu0 %v3394_v18  ;;  %2479 = vmatpush.bf16.msra.mxu1 %v3458_v43 }
 0x2f1   :  { %2466 = vmatpush.bf16.msra.mxu0 %v3386_v16  ;;  %2480 = vmatpush.bf16.msra.mxu1 %v3450_v33 }
 0x2f4   :  { %2467 = vmatmul.bf16.vlgmr.msra.gmra.mxu0 %v4406_v21  ;;  %2481 = vmatmul.bf16.vlgmr.msra.gmra.mxu1 %v4408_v46 }
 0x31e   :  { %v2328_v47 = vpop.f32.mrf.mxu2  ;;  %v2342_v30 = vpop.f32.mrf.mxu3 }
 0x326   :  { %v2330_v27 = vpop.f32.mrf.mxu2  ;;  %v2344_v59 = vpop.f32.mrf.mxu3 }
 0x330   :  { %v2300_v44 = vpop.f32.mrf.mxu0  ;;  %v2314_v32 = vpop.f32.mrf.mxu1 }
 0x331   :  { %v2301_v19 = vadd.f32 %v2300_v44, %v4354_v23 }
 0x333   :  { %v2315_v15 = vadd.f32 %v2314_v32, %v2301_v19 }
 0x335   :  { %v2329_v7 = vadd.f32 %v2328_v47, %v2315_v15 }
 0x337   :  { %v2343_v9 = vadd.f32 %v2342_v30, %v2329_v7 }
 0x338   :  { %v2302_v6 = vpop.f32.mrf.mxu0  ;;  %v2316_v39 = vpop.f32.mrf.mxu1 }
 0x339   :  { %v2303_v55 = vadd.f32 %v2302_v6, %v4402_v10  ;;  %v2384_v46 = vpop.f32.mrf.mxu2  ;;  %v2398_v13 = vpop.f32.mrf.mxu3 }
 0x33b   :  { %v2317_v22 = vadd.f32 %v2316_v39, %v2303_v55 }
 0x33d   :  { %v2331_v28 = vadd.f32 %v2330_v27, %v2317_v22 }
 0x33f   :  { %v2345_v23 = vadd.f32 %v2344_v59, %v2331_v28 }
 0x340   :  { %v2356_v12 = vpop.f32.mrf.mxu0  ;;  %v2370_v21 = vpop.f32.mrf.mxu1 }
 0x341   :  { %v2357_v49 = vadd.f32 %v2356_v12, %v2343_v9  ;;  %v2386_v26 = vpop.f32.mrf.mxu2  ;;  %v2400_v29 = vpop.f32.mrf.mxu3 }
 0x343   :  { %v2371_v41 = vadd.f32 %v2370_v21, %v2357_v49 }
 0x345   :  { %v2385_v31 = vadd.f32 %v2384_v46, %v2371_v41 }
 0x347   :  { %v2399_v8 = vadd.f32 %v2398_v13, %v2385_v31 }
 0x348   :  { %v2358_v50 = vpop.f32.mrf.mxu0  ;;  %v2372_v10 = vpop.f32.mrf.mxu1 }
 0x349   :  { %2515 = vst [vmem:[%s4445_s9] sm:$0xff] %v2399_v8  ;;  %v2359_v53 = vadd.f32 %v2358_v50, %v2345_v23  ;;  %v2440_v63 = vpop.f32.mrf.mxu2  ;;  %v2454_v38 = vpop.f32.mrf.mxu3 }
 0x34b   :  { %v2373_v54 = vadd.f32 %v2372_v10, %v2359_v53 }
 0x34d   :  { %v2387_v11 = vadd.f32 %v2386_v26, %v2373_v54 }
 0x34f   :  { %v2401_v36 = vadd.f32 %v2400_v29, %v2387_v11 }
 0x350   :  { %v2412_v4 = vpop.f32.mrf.mxu0  ;;  %v2426_v37 = vpop.f32.mrf.mxu1 }
 0x351   :  { %2517 = vst [vmem:[%s4445_s9 + $0x10] sm:$0xff] %v2401_v36  ;;  %v2413_v25 = vadd.f32 %v2412_v4, %v4356_v2  ;;  %v2442_v40 = vpop.f32.mrf.mxu2  ;;  %v2456_v61 = vpop.f32.mrf.mxu3 }
 0x353   :  { %v2427_v56 = vadd.f32 %v2426_v37, %v2413_v25 }
 0x355   :  { %v2441_v24 = vadd.f32 %v2440_v63, %v2427_v56 }
 0x357   :  { %v2455_v48 = vadd.f32 %v2454_v38, %v2441_v24 }
 0x358   :  { %v2414_v3 = vpop.f32.mrf.mxu0  ;;  %v2428_v42 = vpop.f32.mrf.mxu1 }
 0x359   :  { %v2415_v58 = vadd.f32 %v2414_v3, %v4404_v62 }
 0x35b   :  { %v2429_v51 = vadd.f32 %v2428_v42, %v2415_v58 }
 0x35d   :  { %v2443_v35 = vadd.f32 %v2442_v40, %v2429_v51 }
 0x35f   :  { %v2496_v52 = vpop.f32.mrf.mxu2  ;;  %v2510_v14 = vpop.f32.mrf.mxu3  ;;  %v2457_v2 = vadd.f32 %v2456_v61, %v2443_v35 }
 0x367   :  { %v2498_v0 = vpop.f32.mrf.mxu2  ;;  %v2512_v16 = vpop.f32.mrf.mxu3 }
 0x371   :  { %v2468_v57 = vpop.f32.mrf.mxu0  ;;  %v2482_v1 = vpop.f32.mrf.mxu1 }
 0x372   :  { %v2469_v45 = vadd.f32 %v2468_v57, %v2455_v48 }
 0x374   :  { %v2483_v20 = vadd.f32 %v2482_v1, %v2469_v45 }
 0x376   :  { %v2497_v17 = vadd.f32 %v2496_v52, %v2483_v20 }
 0x378   :  { %v2511_v18 = vadd.f32 %v2510_v14, %v2497_v17 }
 0x379   :  { %v2470_v43 = vpop.f32.mrf.mxu0  ;;  %v2484_v34 = vpop.f32.mrf.mxu1 }
 0x37a   :  { %2516 = vst [vmem:[%s4445_s9 + $0x8] sm:$0xff] %v2511_v18  ;;  %v2471_v5 = vadd.f32 %v2470_v43, %v2457_v2 }
 0x37c   :  { %v2485_v62 = vadd.f32 %v2484_v34, %v2471_v5 }
 0x37e   :  { %v2499_v60 = vadd.f32 %v2498_v0, %v2485_v62 }
 0x380   :  { %v2513_v33 = vadd.f32 %v2512_v16, %v2499_v60 }
 0x382   :  { %2518 = vst [vmem:[%s4445_s9 + $0x18] sm:$0xff] %v2513_v33 }
 0x383   :  { %2523 = vsyncpa [#allocation3], 1 }
 0x384   :  { %2524 = vsyncpa [#allocation5], 1 }

</bundles_post_ra>
